<compile_context>
chip_gen: v5e
topology: v5e:2x2
jax: 0.10.0
libtpu: 0.0.40
codegen_flags: <defaults>
</compile_context>

<pallas_src>
import jax
import jax.numpy as jnp
from jax import lax
from jax.experimental import pallas as pl
from jax.experimental.pallas import tpu as pltpu

I_DIM = 3        # gru1 input size
H1 = 16          # gru1 hidden size
H2 = 4           # gru2 hidden size
O_DIM = 2        # fc output size
G1 = 3 * H1      # 48 (r|z|n) gate width, layer 1
G2 = 3 * H2      # 12 (r|z|n) gate width, layer 2


def _make_kernel(T, B):
    """Builds the single-invocation GRU kernel for static (T, B)."""

    def kernel(x_ref,
               wih1_ref, bih1_ref,
               whhcat_ref,
               wih2_ref, bih2_ref,
               wfc_ref, bfc_ref,
               out_ref):
        # ---- hoisted: layer-1 input projection for ALL time steps at once ----
        gi1_all = jnp.dot(x_ref[...], wih1_ref[...],
                          preferred_element_type=jnp.float32) + bih1_ref[...]

        whhcat = whhcat_ref[...]      # (H1+H2+1, G1+G2) block-diag + bias row
        wih2 = whhcat.dtype.type(0) + wih2_ref[...]   # (H1, G2)
        bih2 = bih2_ref[...]          # (1, G2)

        # h0 = zeros, carried in registers across the unrolled time loop.
        h1 = jnp.zeros((B, H1), jnp.float32)
        h2 = jnp.zeros((B, H2), jnp.float32)
        ones_col = jnp.ones((B, 1), jnp.float32)      # selects the bias row (hoisted)
        h2_steps = []

        for t in range(T):                 # T static & tiny -> full unroll
            # Fused hidden projection for BOTH layers + folded b_hh biases.
            hcat = jnp.concatenate([h1, h2, ones_col], axis=1)        # (B, H1+H2+1)
            gh = jnp.dot(hcat, whhcat, preferred_element_type=jnp.float32)
            gh1 = gh[:, :G1]                                          # (B, G1)
            gh2 = gh[:, G1:]                                          # (B, G2)

            # ---------------- layer 1 ----------------
            gi1 = gi1_all[t * B:(t + 1) * B, :]                       # (B, G1)
            rz1 = jax.nn.sigmoid(gi1[:, :2 * H1] + gh1[:, :2 * H1])   # r|z together
            n1 = jnp.tanh(gi1[:, 2 * H1:] + rz1[:, :H1] * gh1[:, 2 * H1:])
            z1 = rz1[:, H1:]
            h1 = (1.0 - z1) * n1 + z1 * h1

            # ---------------- layer 2 ----------------
            gi2 = jnp.dot(h1, wih2, preferred_element_type=jnp.float32) + bih2
            rz2 = jax.nn.sigmoid(gi2[:, :2 * H2] + gh2[:, :2 * H2])
            n2 = jnp.tanh(gi2[:, 2 * H2:] + rz2[:, :H2] * gh2[:, 2 * H2:])
            z2 = rz2[:, H2:]
            h2 = (1.0 - z2) * n2 + z2 * h2

            h2_steps.append(h2)

        # ---- hoisted FC head: one matmul + one output store ----
        h2_all = jnp.concatenate(h2_steps, axis=0)                    # (T*B, H2)
        y = jnp.dot(h2_all, wfc_ref[...],
                    preferred_element_type=jnp.float32) + bfc_ref[...]
        out_ref[...] = y.astype(out_ref.dtype)

    return kernel


def gru_forward(x, params):
    """x: (T, B, I_DIM) float32 -> (T, B, O_DIM) float32."""
    T, B, _ = x.shape
    (wih1, whh1, bih1, bhh1,
     wih2, whh2, bih2, bhh2,
     wfc, bfc) = params

    # Trace-time packing: block-diagonal hidden weight with the hidden biases
    # (b_hh for r, z, n) folded in as an extra row, so the in-loop matmul
    # produces gh = h @ W_hh^T + b_hh exactly as PyTorch does.
    top = jnp.concatenate([whh1.T, jnp.zeros((H1, G2), jnp.float32)], axis=1)
    mid = jnp.concatenate([jnp.zeros((H2, G1), jnp.float32), whh2.T], axis=1)
    bot = jnp.concatenate([bhh1, bhh2], axis=1)
    whhcat = jnp.concatenate([top, mid, bot], axis=0)   # (H1+H2+1, G1+G2)

    args = (x.reshape(T * B, I_DIM),
            wih1.T, bih1,
            whhcat,
            wih2.T, bih2,
            wfc.T, bfc)

    vmem = pl.BlockSpec(memory_space=pltpu.MemorySpace.VMEM)
    out = pl.pallas_call(
        _make_kernel(T, B),
        out_shape=jax.ShapeDtypeStruct((T * B, O_DIM), jnp.float32),
        in_specs=[vmem] * len(args),
        out_specs=vmem,
    )(*args)
    return out.reshape(T, B, O_DIM)


def make_params(key):
    """Deterministic synthetic parameters matching nn.GRU / nn.Linear shapes."""
    ks = jax.random.split(key, 10)
    wih1 = 0.3 * jax.random.normal(ks[0], (3 * H1, I_DIM), jnp.float32)   # weight_ih_l0
    whh1 = 0.3 * jax.random.normal(ks[1], (3 * H1, H1), jnp.float32)      # weight_hh_l0
    bih1 = 0.1 * jax.random.normal(ks[2], (1, 3 * H1), jnp.float32)
    bhh1 = 0.1 * jax.random.normal(ks[3], (1, 3 * H1), jnp.float32)
    wih2 = 0.3 * jax.random.normal(ks[4], (3 * H2, H1), jnp.float32)
    whh2 = 0.3 * jax.random.normal(ks[5], (3 * H2, H2), jnp.float32)
    bih2 = 0.1 * jax.random.normal(ks[6], (1, 3 * H2), jnp.float32)
    bhh2 = 0.1 * jax.random.normal(ks[7], (1, 3 * H2), jnp.float32)
    wfc = 0.3 * jax.random.normal(ks[8], (O_DIM, H2), jnp.float32)
    bfc = 0.1 * jax.random.normal(ks[9], (1, O_DIM), jnp.float32)
    return (wih1, whh1, bih1, bhh1, wih2, whh2, bih2, bhh2, wfc, bfc)


def gru_reference(x, params):
    """Pure-JAX reference (lax.scan) of the same forward pass."""
    (wih1, whh1, bih1, bhh1,
     wih2, whh2, bih2, bhh2,
     wfc, bfc) = params
    B = x.shape[1]

    def cell(x_t, h, w_ih, w_hh, b_ih, b_hh):
        gi = x_t @ w_ih.T + b_ih
        gh = h @ w_hh.T + b_hh
        i_r, i_z, i_n = jnp.split(gi, 3, axis=-1)
        h_r, h_z, h_n = jnp.split(gh, 3, axis=-1)
        r = jax.nn.sigmoid(i_r + h_r)
        z = jax.nn.sigmoid(i_z + h_z)
        n = jnp.tanh(i_n + r * h_n)
        return (1.0 - z) * n + z * h

    def step(carry, x_t):
        h1, h2 = carry
        h1 = cell(x_t, h1, wih1, whh1, bih1, bhh1)
        h2 = cell(h1, h2, wih2, whh2, bih2, bhh2)
        y = h2 @ wfc.T + bfc
        return (h1, h2), y

    init = (jnp.zeros((B, H1), jnp.float32), jnp.zeros((B, H2), jnp.float32))
    _, ys = lax.scan(step, init, x)
    return ys


if __name__ == "__main__":
    key = jax.random.PRNGKey(0)
    k_x, k_p = jax.random.split(key)

    T, B = 8, 8
    x = jax.random.normal(k_x, (T, B, I_DIM), jnp.float32)   # (seq, batch, feat)
    params = make_params(k_p)

    out = gru_forward(x, params)
    out = jax.block_until_ready(out)

    ref = gru_reference(x, params)
    assert out.shape == (T, B, O_DIM)
    assert jnp.allclose(out, ref, atol=1e-4, rtol=1e-4), "mismatch vs reference"

    print("KERNEL_OK")
</pallas_src>

<mosaic_0001>
module attributes {stable_mosaic.version = 11 : i64} {
  func.func @kernel(%arg0: memref<64x3xf32, #tpu.memory_space<vmem>>, %arg1: memref<3x48xf32, #tpu.memory_space<vmem>>, %arg2: memref<1x48xf32, #tpu.memory_space<vmem>>, %arg3: memref<21x60xf32, #tpu.memory_space<vmem>>, %arg4: memref<16x12xf32, #tpu.memory_space<vmem>>, %arg5: memref<1x12xf32, #tpu.memory_space<vmem>>, %arg6: memref<4x2xf32, #tpu.memory_space<vmem>>, %arg7: memref<1x2xf32, #tpu.memory_space<vmem>>, %arg8: memref<64x2xf32, #tpu.memory_space<vmem>>) attributes {dimension_semantics = [], scalar_prefetch = 0 : i64, scratch_operands = 0 : i64, tpu.core_type = #tpu.core_type<tc>} {
    %c0 = arith.constant 0 : index
    %c0_0 = arith.constant 0 : index
    %0 = vector.load %arg0[%c0, %c0_0] : memref<64x3xf32, #tpu.memory_space<vmem>>, vector<64x3xf32>
    %c0_1 = arith.constant 0 : index
    %c0_2 = arith.constant 0 : index
    %1 = vector.load %arg1[%c0_1, %c0_2] : memref<3x48xf32, #tpu.memory_space<vmem>>, vector<3x48xf32>
    %cst = arith.constant dense<0.000000e+00> : vector<64x48xf32>
    %2 = tpu.matmul %0, %1, %cst {dimension_numbers = #tpu.dot_dimension_numbers<[1], [0], [0], [1], [0, 0, 1, 1], [], []>} : vector<64x3xf32>, vector<3x48xf32>, vector<64x48xf32> -> vector<64x48xf32>
    %c0_3 = arith.constant 0 : index
    %c0_4 = arith.constant 0 : index
    %3 = vector.load %arg2[%c0_3, %c0_4] : memref<1x48xf32, #tpu.memory_space<vmem>>, vector<1x48xf32>
    %4 = vector.broadcast %3 : vector<1x48xf32> to vector<64x48xf32>
    %5 = arith.addf %2, %4 : vector<64x48xf32>
    %c0_5 = arith.constant 0 : index
    %c0_6 = arith.constant 0 : index
    %6 = vector.load %arg3[%c0_5, %c0_6] : memref<21x60xf32, #tpu.memory_space<vmem>>, vector<21x60xf32>
    %c0_7 = arith.constant 0 : index
    %c0_8 = arith.constant 0 : index
    %7 = vector.load %arg4[%c0_7, %c0_8] : memref<16x12xf32, #tpu.memory_space<vmem>>, vector<16x12xf32>
    %cst_9 = arith.constant 0.000000e+00 : f32
    %8 = vector.broadcast %cst_9 : f32 to vector<16x12xf32>
    %9 = arith.addf %8, %7 : vector<16x12xf32>
    %c0_10 = arith.constant 0 : index
    %c0_11 = arith.constant 0 : index
    %10 = vector.load %arg5[%c0_10, %c0_11] : memref<1x12xf32, #tpu.memory_space<vmem>>, vector<1x12xf32>
    %cst_12 = arith.constant 0.000000e+00 : f32
    %11 = vector.broadcast %cst_12 : f32 to vector<8x16xf32>
    %cst_13 = arith.constant 0.000000e+00 : f32
    %12 = vector.broadcast %cst_13 : f32 to vector<8x4xf32>
    %cst_14 = arith.constant 1.000000e+00 : f32
    %13 = vector.broadcast %cst_14 : f32 to vector<8x1xf32>
    %14 = tpu.concatenate %11, %12, %13 in 1 : vector<8x16xf32>, vector<8x4xf32>, vector<8x1xf32> -> vector<8x21xf32>
    %cst_15 = arith.constant dense<0.000000e+00> : vector<8x60xf32>
    %15 = tpu.matmul %14, %6, %cst_15 {dimension_numbers = #tpu.dot_dimension_numbers<[1], [0], [0], [1], [0, 0, 1, 1], [], []>} : vector<8x21xf32>, vector<21x60xf32>, vector<8x60xf32> -> vector<8x60xf32>
    %16 = vector.extract_strided_slice %15 {offsets = [0, 0], sizes = [8, 48], strides = [1, 1]} : vector<8x60xf32> to vector<8x48xf32>
    %17 = vector.extract_strided_slice %15 {offsets = [0, 48], sizes = [8, 12], strides = [1, 1]} : vector<8x60xf32> to vector<8x12xf32>
    %18 = vector.extract_strided_slice %5 {offsets = [0, 0], sizes = [8, 48], strides = [1, 1]} : vector<64x48xf32> to vector<8x48xf32>
    %19 = vector.extract_strided_slice %18 {offsets = [0, 0], sizes = [8, 32], strides = [1, 1]} : vector<8x48xf32> to vector<8x32xf32>
    %20 = vector.extract_strided_slice %16 {offsets = [0, 0], sizes = [8, 32], strides = [1, 1]} : vector<8x48xf32> to vector<8x32xf32>
    %21 = arith.addf %19, %20 : vector<8x32xf32>
    %22 = arith.negf %21 : vector<8x32xf32>
    %23 = math.exp %22 : vector<8x32xf32>
    %cst_16 = arith.constant 1.000000e+00 : f32
    %24 = vector.broadcast %cst_16 : f32 to vector<8x32xf32>
    %25 = arith.addf %24, %23 : vector<8x32xf32>
    %26 = arith.divf %24, %25 : vector<8x32xf32>
    %27 = vector.extract_strided_slice %18 {offsets = [0, 32], sizes = [8, 16], strides = [1, 1]} : vector<8x48xf32> to vector<8x16xf32>
    %28 = vector.extract_strided_slice %26 {offsets = [0, 0], sizes = [8, 16], strides = [1, 1]} : vector<8x32xf32> to vector<8x16xf32>
    %29 = vector.extract_strided_slice %16 {offsets = [0, 32], sizes = [8, 16], strides = [1, 1]} : vector<8x48xf32> to vector<8x16xf32>
    %30 = arith.mulf %28, %29 : vector<8x16xf32>
    %31 = arith.addf %27, %30 : vector<8x16xf32>
    %32 = math.tanh %31 : vector<8x16xf32>
    %33 = vector.extract_strided_slice %26 {offsets = [0, 16], sizes = [8, 16], strides = [1, 1]} : vector<8x32xf32> to vector<8x16xf32>
    %cst_17 = arith.constant 1.000000e+00 : f32
    %34 = vector.broadcast %cst_17 : f32 to vector<8x16xf32>
    %35 = arith.subf %34, %33 : vector<8x16xf32>
    %36 = arith.mulf %35, %32 : vector<8x16xf32>
    %37 = arith.mulf %33, %11 : vector<8x16xf32>
    %38 = arith.addf %36, %37 : vector<8x16xf32>
    %cst_18 = arith.constant dense<0.000000e+00> : vector<8x12xf32>
    %39 = tpu.matmul %38, %9, %cst_18 {dimension_numbers = #tpu.dot_dimension_numbers<[1], [0], [0], [1], [0, 0, 1, 1], [], []>} : vector<8x16xf32>, vector<16x12xf32>, vector<8x12xf32> -> vector<8x12xf32>
    %40 = vector.broadcast %10 : vector<1x12xf32> to vector<8x12xf32>
    %41 = arith.addf %39, %40 : vector<8x12xf32>
    %42 = vector.extract_strided_slice %41 {offsets = [0, 0], sizes = [8, 8], strides = [1, 1]} : vector<8x12xf32> to vector<8x8xf32>
    %43 = vector.extract_strided_slice %17 {offsets = [0, 0], sizes = [8, 8], strides = [1, 1]} : vector<8x12xf32> to vector<8x8xf32>
    %44 = arith.addf %42, %43 : vector<8x8xf32>
    %45 = arith.negf %44 : vector<8x8xf32>
    %46 = math.exp %45 : vector<8x8xf32>
    %cst_19 = arith.constant 1.000000e+00 : f32
    %47 = vector.broadcast %cst_19 : f32 to vector<8x8xf32>
    %48 = arith.addf %47, %46 : vector<8x8xf32>
    %49 = arith.divf %47, %48 : vector<8x8xf32>
    %50 = vector.extract_strided_slice %41 {offsets = [0, 8], sizes = [8, 4], strides = [1, 1]} : vector<8x12xf32> to vector<8x4xf32>
    %51 = vector.extract_strided_slice %49 {offsets = [0, 0], sizes = [8, 4], strides = [1, 1]} : vector<8x8xf32> to vector<8x4xf32>
    %52 = vector.extract_strided_slice %17 {offsets = [0, 8], sizes = [8, 4], strides = [1, 1]} : vector<8x12xf32> to vector<8x4xf32>
    %53 = arith.mulf %51, %52 : vector<8x4xf32>
    %54 = arith.addf %50, %53 : vector<8x4xf32>
    %55 = math.tanh %54 : vector<8x4xf32>
    %56 = vector.extract_strided_slice %49 {offsets = [0, 4], sizes = [8, 4], strides = [1, 1]} : vector<8x8xf32> to vector<8x4xf32>
    %cst_20 = arith.constant 1.000000e+00 : f32
    %57 = vector.broadcast %cst_20 : f32 to vector<8x4xf32>
    %58 = arith.subf %57, %56 : vector<8x4xf32>
    %59 = arith.mulf %58, %55 : vector<8x4xf32>
    %60 = arith.mulf %56, %12 : vector<8x4xf32>
    %61 = arith.addf %59, %60 : vector<8x4xf32>
    %62 = tpu.concatenate %38, %61, %13 in 1 : vector<8x16xf32>, vector<8x4xf32>, vector<8x1xf32> -> vector<8x21xf32>
    %cst_21 = arith.constant dense<0.000000e+00> : vector<8x60xf32>
    %63 = tpu.matmul %62, %6, %cst_21 {dimension_numbers = #tpu.dot_dimension_numbers<[1], [0], [0], [1], [0, 0, 1, 1], [], []>} : vector<8x21xf32>, vector<21x60xf32>, vector<8x60xf32> -> vector<8x60xf32>
    %64 = vector.extract_strided_slice %63 {offsets = [0, 0], sizes = [8, 48], strides = [1, 1]} : vector<8x60xf32> to vector<8x48xf32>
    %65 = vector.extract_strided_slice %63 {offsets = [0, 48], sizes = [8, 12], strides = [1, 1]} : vector<8x60xf32> to vector<8x12xf32>
    %66 = vector.extract_strided_slice %5 {offsets = [8, 0], sizes = [8, 48], strides = [1, 1]} : vector<64x48xf32> to vector<8x48xf32>
    %67 = vector.extract_strided_slice %66 {offsets = [0, 0], sizes = [8, 32], strides = [1, 1]} : vector<8x48xf32> to vector<8x32xf32>
    %68 = vector.extract_strided_slice %64 {offsets = [0, 0], sizes = [8, 32], strides = [1, 1]} : vector<8x48xf32> to vector<8x32xf32>
    %69 = arith.addf %67, %68 : vector<8x32xf32>
    %70 = arith.negf %69 : vector<8x32xf32>
    %71 = math.exp %70 : vector<8x32xf32>
    %cst_22 = arith.constant 1.000000e+00 : f32
    %72 = vector.broadcast %cst_22 : f32 to vector<8x32xf32>
    %73 = arith.addf %72, %71 : vector<8x32xf32>
    %74 = arith.divf %72, %73 : vector<8x32xf32>
    %75 = vector.extract_strided_slice %66 {offsets = [0, 32], sizes = [8, 16], strides = [1, 1]} : vector<8x48xf32> to vector<8x16xf32>
    %76 = vector.extract_strided_slice %74 {offsets = [0, 0], sizes = [8, 16], strides = [1, 1]} : vector<8x32xf32> to vector<8x16xf32>
    %77 = vector.extract_strided_slice %64 {offsets = [0, 32], sizes = [8, 16], strides = [1, 1]} : vector<8x48xf32> to vector<8x16xf32>
    %78 = arith.mulf %76, %77 : vector<8x16xf32>
    %79 = arith.addf %75, %78 : vector<8x16xf32>
    %80 = math.tanh %79 : vector<8x16xf32>
    %81 = vector.extract_strided_slice %74 {offsets = [0, 16], sizes = [8, 16], strides = [1, 1]} : vector<8x32xf32> to vector<8x16xf32>
    %cst_23 = arith.constant 1.000000e+00 : f32
    %82 = vector.broadcast %cst_23 : f32 to vector<8x16xf32>
    %83 = arith.subf %82, %81 : vector<8x16xf32>
    %84 = arith.mulf %83, %80 : vector<8x16xf32>
    %85 = arith.mulf %81, %38 : vector<8x16xf32>
    %86 = arith.addf %84, %85 : vector<8x16xf32>
    %cst_24 = arith.constant dense<0.000000e+00> : vector<8x12xf32>
    %87 = tpu.matmul %86, %9, %cst_24 {dimension_numbers = #tpu.dot_dimension_numbers<[1], [0], [0], [1], [0, 0, 1, 1], [], []>} : vector<8x16xf32>, vector<16x12xf32>, vector<8x12xf32> -> vector<8x12xf32>
    %88 = vector.broadcast %10 : vector<1x12xf32> to vector<8x12xf32>
    %89 = arith.addf %87, %88 : vector<8x12xf32>
    %90 = vector.extract_strided_slice %89 {offsets = [0, 0], sizes = [8, 8], strides = [1, 1]} : vector<8x12xf32> to vector<8x8xf32>
    %91 = vector.extract_strided_slice %65 {offsets = [0, 0], sizes = [8, 8], strides = [1, 1]} : vector<8x12xf32> to vector<8x8xf32>
    %92 = arith.addf %90, %91 : vector<8x8xf32>
    %93 = arith.negf %92 : vector<8x8xf32>
    %94 = math.exp %93 : vector<8x8xf32>
    %cst_25 = arith.constant 1.000000e+00 : f32
    %95 = vector.broadcast %cst_25 : f32 to vector<8x8xf32>
    %96 = arith.addf %95, %94 : vector<8x8xf32>
    %97 = arith.divf %95, %96 : vector<8x8xf32>
    %98 = vector.extract_strided_slice %89 {offsets = [0, 8], sizes = [8, 4], strides = [1, 1]} : vector<8x12xf32> to vector<8x4xf32>
    %99 = vector.extract_strided_slice %97 {offsets = [0, 0], sizes = [8, 4], strides = [1, 1]} : vector<8x8xf32> to vector<8x4xf32>
    %100 = vector.extract_strided_slice %65 {offsets = [0, 8], sizes = [8, 4], strides = [1, 1]} : vector<8x12xf32> to vector<8x4xf32>
    %101 = arith.mulf %99, %100 : vector<8x4xf32>
    %102 = arith.addf %98, %101 : vector<8x4xf32>
    %103 = math.tanh %102 : vector<8x4xf32>
    %104 = vector.extract_strided_slice %97 {offsets = [0, 4], sizes = [8, 4], strides = [1, 1]} : vector<8x8xf32> to vector<8x4xf32>
    %cst_26 = arith.constant 1.000000e+00 : f32
    %105 = vector.broadcast %cst_26 : f32 to vector<8x4xf32>
    %106 = arith.subf %105, %104 : vector<8x4xf32>
    %107 = arith.mulf %106, %103 : vector<8x4xf32>
    %108 = arith.mulf %104, %61 : vector<8x4xf32>
    %109 = arith.addf %107, %108 : vector<8x4xf32>
    %110 = tpu.concatenate %86, %109, %13 in 1 : vector<8x16xf32>, vector<8x4xf32>, vector<8x1xf32> -> vector<8x21xf32>
    %cst_27 = arith.constant dense<0.000000e+00> : vector<8x60xf32>
    %111 = tpu.matmul %110, %6, %cst_27 {dimension_numbers = #tpu.dot_dimension_numbers<[1], [0], [0], [1], [0, 0, 1, 1], [], []>} : vector<8x21xf32>, vector<21x60xf32>, vector<8x60xf32> -> vector<8x60xf32>
    %112 = vector.extract_strided_slice %111 {offsets = [0, 0], sizes = [8, 48], strides = [1, 1]} : vector<8x60xf32> to vector<8x48xf32>
    %113 = vector.extract_strided_slice %111 {offsets = [0, 48], sizes = [8, 12], strides = [1, 1]} : vector<8x60xf32> to vector<8x12xf32>
    %114 = vector.extract_strided_slice %5 {offsets = [16, 0], sizes = [8, 48], strides = [1, 1]} : vector<64x48xf32> to vector<8x48xf32>
    %115 = vector.extract_strided_slice %114 {offsets = [0, 0], sizes = [8, 32], strides = [1, 1]} : vector<8x48xf32> to vector<8x32xf32>
    %116 = vector.extract_strided_slice %112 {offsets = [0, 0], sizes = [8, 32], strides = [1, 1]} : vector<8x48xf32> to vector<8x32xf32>
    %117 = arith.addf %115, %116 : vector<8x32xf32>
    %118 = arith.negf %117 : vector<8x32xf32>
    %119 = math.exp %118 : vector<8x32xf32>
    %cst_28 = arith.constant 1.000000e+00 : f32
    %120 = vector.broadcast %cst_28 : f32 to vector<8x32xf32>
    %121 = arith.addf %120, %119 : vector<8x32xf32>
    %122 = arith.divf %120, %121 : vector<8x32xf32>
    %123 = vector.extract_strided_slice %114 {offsets = [0, 32], sizes = [8, 16], strides = [1, 1]} : vector<8x48xf32> to vector<8x16xf32>
    %124 = vector.extract_strided_slice %122 {offsets = [0, 0], sizes = [8, 16], strides = [1, 1]} : vector<8x32xf32> to vector<8x16xf32>
    %125 = vector.extract_strided_slice %112 {offsets = [0, 32], sizes = [8, 16], strides = [1, 1]} : vector<8x48xf32> to vector<8x16xf32>
    %126 = arith.mulf %124, %125 : vector<8x16xf32>
    %127 = arith.addf %123, %126 : vector<8x16xf32>
    %128 = math.tanh %127 : vector<8x16xf32>
    %129 = vector.extract_strided_slice %122 {offsets = [0, 16], sizes = [8, 16], strides = [1, 1]} : vector<8x32xf32> to vector<8x16xf32>
    %cst_29 = arith.constant 1.000000e+00 : f32
    %130 = vector.broadcast %cst_29 : f32 to vector<8x16xf32>
    %131 = arith.subf %130, %129 : vector<8x16xf32>
    %132 = arith.mulf %131, %128 : vector<8x16xf32>
    %133 = arith.mulf %129, %86 : vector<8x16xf32>
    %134 = arith.addf %132, %133 : vector<8x16xf32>
    %cst_30 = arith.constant dense<0.000000e+00> : vector<8x12xf32>
    %135 = tpu.matmul %134, %9, %cst_30 {dimension_numbers = #tpu.dot_dimension_numbers<[1], [0], [0], [1], [0, 0, 1, 1], [], []>} : vector<8x16xf32>, vector<16x12xf32>, vector<8x12xf32> -> vector<8x12xf32>
    %136 = vector.broadcast %10 : vector<1x12xf32> to vector<8x12xf32>
    %137 = arith.addf %135, %136 : vector<8x12xf32>
    %138 = vector.extract_strided_slice %137 {offsets = [0, 0], sizes = [8, 8], strides = [1, 1]} : vector<8x12xf32> to vector<8x8xf32>
    %139 = vector.extract_strided_slice %113 {offsets = [0, 0], sizes = [8, 8], strides = [1, 1]} : vector<8x12xf32> to vector<8x8xf32>
    %140 = arith.addf %138, %139 : vector<8x8xf32>
    %141 = arith.negf %140 : vector<8x8xf32>
    %142 = math.exp %141 : vector<8x8xf32>
    %cst_31 = arith.constant 1.000000e+00 : f32
    %143 = vector.broadcast %cst_31 : f32 to vector<8x8xf32>
    %144 = arith.addf %143, %142 : vector<8x8xf32>
    %145 = arith.divf %143, %144 : vector<8x8xf32>
    %146 = vector.extract_strided_slice %137 {offsets = [0, 8], sizes = [8, 4], strides = [1, 1]} : vector<8x12xf32> to vector<8x4xf32>
    %147 = vector.extract_strided_slice %145 {offsets = [0, 0], sizes = [8, 4], strides = [1, 1]} : vector<8x8xf32> to vector<8x4xf32>
    %148 = vector.extract_strided_slice %113 {offsets = [0, 8], sizes = [8, 4], strides = [1, 1]} : vector<8x12xf32> to vector<8x4xf32>
    %149 = arith.mulf %147, %148 : vector<8x4xf32>
    %150 = arith.addf %146, %149 : vector<8x4xf32>
    %151 = math.tanh %150 : vector<8x4xf32>
    %152 = vector.extract_strided_slice %145 {offsets = [0, 4], sizes = [8, 4], strides = [1, 1]} : vector<8x8xf32> to vector<8x4xf32>
    %cst_32 = arith.constant 1.000000e+00 : f32
    %153 = vector.broadcast %cst_32 : f32 to vector<8x4xf32>
    %154 = arith.subf %153, %152 : vector<8x4xf32>
    %155 = arith.mulf %154, %151 : vector<8x4xf32>
    %156 = arith.mulf %152, %109 : vector<8x4xf32>
    %157 = arith.addf %155, %156 : vector<8x4xf32>
    %158 = tpu.concatenate %134, %157, %13 in 1 : vector<8x16xf32>, vector<8x4xf32>, vector<8x1xf32> -> vector<8x21xf32>
    %cst_33 = arith.constant dense<0.000000e+00> : vector<8x60xf32>
    %159 = tpu.matmul %158, %6, %cst_33 {dimension_numbers = #tpu.dot_dimension_numbers<[1], [0], [0], [1], [0, 0, 1, 1], [], []>} : vector<8x21xf32>, vector<21x60xf32>, vector<8x60xf32> -> vector<8x60xf32>
    %160 = vector.extract_strided_slice %159 {offsets = [0, 0], sizes = [8, 48], strides = [1, 1]} : vector<8x60xf32> to vector<8x48xf32>
    %161 = vector.extract_strided_slice %159 {offsets = [0, 48], sizes = [8, 12], strides = [1, 1]} : vector<8x60xf32> to vector<8x12xf32>
    %162 = vector.extract_strided_slice %5 {offsets = [24, 0], sizes = [8, 48], strides = [1, 1]} : vector<64x48xf32> to vector<8x48xf32>
    %163 = vector.extract_strided_slice %162 {offsets = [0, 0], sizes = [8, 32], strides = [1, 1]} : vector<8x48xf32> to vector<8x32xf32>
    %164 = vector.extract_strided_slice %160 {offsets = [0, 0], sizes = [8, 32], strides = [1, 1]} : vector<8x48xf32> to vector<8x32xf32>
    %165 = arith.addf %163, %164 : vector<8x32xf32>
    %166 = arith.negf %165 : vector<8x32xf32>
    %167 = math.exp %166 : vector<8x32xf32>
    %cst_34 = arith.constant 1.000000e+00 : f32
    %168 = vector.broadcast %cst_34 : f32 to vector<8x32xf32>
    %169 = arith.addf %168, %167 : vector<8x32xf32>
    %170 = arith.divf %168, %169 : vector<8x32xf32>
    %171 = vector.extract_strided_slice %162 {offsets = [0, 32], sizes = [8, 16], strides = [1, 1]} : vector<8x48xf32> to vector<8x16xf32>
    %172 = vector.extract_strided_slice %170 {offsets = [0, 0], sizes = [8, 16], strides = [1, 1]} : vector<8x32xf32> to vector<8x16xf32>
    %173 = vector.extract_strided_slice %160 {offsets = [0, 32], sizes = [8, 16], strides = [1, 1]} : vector<8x48xf32> to vector<8x16xf32>
    %174 = arith.mulf %172, %173 : vector<8x16xf32>
    %175 = arith.addf %171, %174 : vector<8x16xf32>
    %176 = math.tanh %175 : vector<8x16xf32>
    %177 = vector.extract_strided_slice %170 {offsets = [0, 16], sizes = [8, 16], strides = [1, 1]} : vector<8x32xf32> to vector<8x16xf32>
    %cst_35 = arith.constant 1.000000e+00 : f32
    %178 = vector.broadcast %cst_35 : f32 to vector<8x16xf32>
    %179 = arith.subf %178, %177 : vector<8x16xf32>
    %180 = arith.mulf %179, %176 : vector<8x16xf32>
    %181 = arith.mulf %177, %134 : vector<8x16xf32>
    %182 = arith.addf %180, %181 : vector<8x16xf32>
    %cst_36 = arith.constant dense<0.000000e+00> : vector<8x12xf32>
    %183 = tpu.matmul %182, %9, %cst_36 {dimension_numbers = #tpu.dot_dimension_numbers<[1], [0], [0], [1], [0, 0, 1, 1], [], []>} : vector<8x16xf32>, vector<16x12xf32>, vector<8x12xf32> -> vector<8x12xf32>
    %184 = vector.broadcast %10 : vector<1x12xf32> to vector<8x12xf32>
    %185 = arith.addf %183, %184 : vector<8x12xf32>
    %186 = vector.extract_strided_slice %185 {offsets = [0, 0], sizes = [8, 8], strides = [1, 1]} : vector<8x12xf32> to vector<8x8xf32>
    %187 = vector.extract_strided_slice %161 {offsets = [0, 0], sizes = [8, 8], strides = [1, 1]} : vector<8x12xf32> to vector<8x8xf32>
    %188 = arith.addf %186, %187 : vector<8x8xf32>
    %189 = arith.negf %188 : vector<8x8xf32>
    %190 = math.exp %189 : vector<8x8xf32>
    %cst_37 = arith.constant 1.000000e+00 : f32
    %191 = vector.broadcast %cst_37 : f32 to vector<8x8xf32>
    %192 = arith.addf %191, %190 : vector<8x8xf32>
    %193 = arith.divf %191, %192 : vector<8x8xf32>
    %194 = vector.extract_strided_slice %185 {offsets = [0, 8], sizes = [8, 4], strides = [1, 1]} : vector<8x12xf32> to vector<8x4xf32>
    %195 = vector.extract_strided_slice %193 {offsets = [0, 0], sizes = [8, 4], strides = [1, 1]} : vector<8x8xf32> to vector<8x4xf32>
    %196 = vector.extract_strided_slice %161 {offsets = [0, 8], sizes = [8, 4], strides = [1, 1]} : vector<8x12xf32> to vector<8x4xf32>
    %197 = arith.mulf %195, %196 : vector<8x4xf32>
    %198 = arith.addf %194, %197 : vector<8x4xf32>
    %199 = math.tanh %198 : vector<8x4xf32>
    %200 = vector.extract_strided_slice %193 {offsets = [0, 4], sizes = [8, 4], strides = [1, 1]} : vector<8x8xf32> to vector<8x4xf32>
    %cst_38 = arith.constant 1.000000e+00 : f32
    %201 = vector.broadcast %cst_38 : f32 to vector<8x4xf32>
    %202 = arith.subf %201, %200 : vector<8x4xf32>
    %203 = arith.mulf %202, %199 : vector<8x4xf32>
    %204 = arith.mulf %200, %157 : vector<8x4xf32>
    %205 = arith.addf %203, %204 : vector<8x4xf32>
    %206 = tpu.concatenate %182, %205, %13 in 1 : vector<8x16xf32>, vector<8x4xf32>, vector<8x1xf32> -> vector<8x21xf32>
    %cst_39 = arith.constant dense<0.000000e+00> : vector<8x60xf32>
    %207 = tpu.matmul %206, %6, %cst_39 {dimension_numbers = #tpu.dot_dimension_numbers<[1], [0], [0], [1], [0, 0, 1, 1], [], []>} : vector<8x21xf32>, vector<21x60xf32>, vector<8x60xf32> -> vector<8x60xf32>
    %208 = vector.extract_strided_slice %207 {offsets = [0, 0], sizes = [8, 48], strides = [1, 1]} : vector<8x60xf32> to vector<8x48xf32>
    %209 = vector.extract_strided_slice %207 {offsets = [0, 48], sizes = [8, 12], strides = [1, 1]} : vector<8x60xf32> to vector<8x12xf32>
    %210 = vector.extract_strided_slice %5 {offsets = [32, 0], sizes = [8, 48], strides = [1, 1]} : vector<64x48xf32> to vector<8x48xf32>
    %211 = vector.extract_strided_slice %210 {offsets = [0, 0], sizes = [8, 32], strides = [1, 1]} : vector<8x48xf32> to vector<8x32xf32>
    %212 = vector.extract_strided_slice %208 {offsets = [0, 0], sizes = [8, 32], strides = [1, 1]} : vector<8x48xf32> to vector<8x32xf32>
    %213 = arith.addf %211, %212 : vector<8x32xf32>
    %214 = arith.negf %213 : vector<8x32xf32>
    %215 = math.exp %214 : vector<8x32xf32>
    %cst_40 = arith.constant 1.000000e+00 : f32
    %216 = vector.broadcast %cst_40 : f32 to vector<8x32xf32>
    %217 = arith.addf %216, %215 : vector<8x32xf32>
    %218 = arith.divf %216, %217 : vector<8x32xf32>
    %219 = vector.extract_strided_slice %210 {offsets = [0, 32], sizes = [8, 16], strides = [1, 1]} : vector<8x48xf32> to vector<8x16xf32>
    %220 = vector.extract_strided_slice %218 {offsets = [0, 0], sizes = [8, 16], strides = [1, 1]} : vector<8x32xf32> to vector<8x16xf32>
    %221 = vector.extract_strided_slice %208 {offsets = [0, 32], sizes = [8, 16], strides = [1, 1]} : vector<8x48xf32> to vector<8x16xf32>
    %222 = arith.mulf %220, %221 : vector<8x16xf32>
    %223 = arith.addf %219, %222 : vector<8x16xf32>
    %224 = math.tanh %223 : vector<8x16xf32>
    %225 = vector.extract_strided_slice %218 {offsets = [0, 16], sizes = [8, 16], strides = [1, 1]} : vector<8x32xf32> to vector<8x16xf32>
    %cst_41 = arith.constant 1.000000e+00 : f32
    %226 = vector.broadcast %cst_41 : f32 to vector<8x16xf32>
    %227 = arith.subf %226, %225 : vector<8x16xf32>
    %228 = arith.mulf %227, %224 : vector<8x16xf32>
    %229 = arith.mulf %225, %182 : vector<8x16xf32>
    %230 = arith.addf %228, %229 : vector<8x16xf32>
    %cst_42 = arith.constant dense<0.000000e+00> : vector<8x12xf32>
    %231 = tpu.matmul %230, %9, %cst_42 {dimension_numbers = #tpu.dot_dimension_numbers<[1], [0], [0], [1], [0, 0, 1, 1], [], []>} : vector<8x16xf32>, vector<16x12xf32>, vector<8x12xf32> -> vector<8x12xf32>
    %232 = vector.broadcast %10 : vector<1x12xf32> to vector<8x12xf32>
    %233 = arith.addf %231, %232 : vector<8x12xf32>
    %234 = vector.extract_strided_slice %233 {offsets = [0, 0], sizes = [8, 8], strides = [1, 1]} : vector<8x12xf32> to vector<8x8xf32>
    %235 = vector.extract_strided_slice %209 {offsets = [0, 0], sizes = [8, 8], strides = [1, 1]} : vector<8x12xf32> to vector<8x8xf32>
    %236 = arith.addf %234, %235 : vector<8x8xf32>
    %237 = arith.negf %236 : vector<8x8xf32>
    %238 = math.exp %237 : vector<8x8xf32>
    %cst_43 = arith.constant 1.000000e+00 : f32
    %239 = vector.broadcast %cst_43 : f32 to vector<8x8xf32>
    %240 = arith.addf %239, %238 : vector<8x8xf32>
    %241 = arith.divf %239, %240 : vector<8x8xf32>
    %242 = vector.extract_strided_slice %233 {offsets = [0, 8], sizes = [8, 4], strides = [1, 1]} : vector<8x12xf32> to vector<8x4xf32>
    %243 = vector.extract_strided_slice %241 {offsets = [0, 0], sizes = [8, 4], strides = [1, 1]} : vector<8x8xf32> to vector<8x4xf32>
    %244 = vector.extract_strided_slice %209 {offsets = [0, 8], sizes = [8, 4], strides = [1, 1]} : vector<8x12xf32> to vector<8x4xf32>
    %245 = arith.mulf %243, %244 : vector<8x4xf32>
    %246 = arith.addf %242, %245 : vector<8x4xf32>
    %247 = math.tanh %246 : vector<8x4xf32>
    %248 = vector.extract_strided_slice %241 {offsets = [0, 4], sizes = [8, 4], strides = [1, 1]} : vector<8x8xf32> to vector<8x4xf32>
    %cst_44 = arith.constant 1.000000e+00 : f32
    %249 = vector.broadcast %cst_44 : f32 to vector<8x4xf32>
    %250 = arith.subf %249, %248 : vector<8x4xf32>
    %251 = arith.mulf %250, %247 : vector<8x4xf32>
    %252 = arith.mulf %248, %205 : vector<8x4xf32>
    %253 = arith.addf %251, %252 : vector<8x4xf32>
    %254 = tpu.concatenate %230, %253, %13 in 1 : vector<8x16xf32>, vector<8x4xf32>, vector<8x1xf32> -> vector<8x21xf32>
    %cst_45 = arith.constant dense<0.000000e+00> : vector<8x60xf32>
    %255 = tpu.matmul %254, %6, %cst_45 {dimension_numbers = #tpu.dot_dimension_numbers<[1], [0], [0], [1], [0, 0, 1, 1], [], []>} : vector<8x21xf32>, vector<21x60xf32>, vector<8x60xf32> -> vector<8x60xf32>
    %256 = vector.extract_strided_slice %255 {offsets = [0, 0], sizes = [8, 48], strides = [1, 1]} : vector<8x60xf32> to vector<8x48xf32>
    %257 = vector.extract_strided_slice %255 {offsets = [0, 48], sizes = [8, 12], strides = [1, 1]} : vector<8x60xf32> to vector<8x12xf32>
    %258 = vector.extract_strided_slice %5 {offsets = [40, 0], sizes = [8, 48], strides = [1, 1]} : vector<64x48xf32> to vector<8x48xf32>
    %259 = vector.extract_strided_slice %258 {offsets = [0, 0], sizes = [8, 32], strides = [1, 1]} : vector<8x48xf32> to vector<8x32xf32>
    %260 = vector.extract_strided_slice %256 {offsets = [0, 0], sizes = [8, 32], strides = [1, 1]} : vector<8x48xf32> to vector<8x32xf32>
    %261 = arith.addf %259, %260 : vector<8x32xf32>
    %262 = arith.negf %261 : vector<8x32xf32>
    %263 = math.exp %262 : vector<8x32xf32>
    %cst_46 = arith.constant 1.000000e+00 : f32
    %264 = vector.broadcast %cst_46 : f32 to vector<8x32xf32>
    %265 = arith.addf %264, %263 : vector<8x32xf32>
    %266 = arith.divf %264, %265 : vector<8x32xf32>
    %267 = vector.extract_strided_slice %258 {offsets = [0, 32], sizes = [8, 16], strides = [1, 1]} : vector<8x48xf32> to vector<8x16xf32>
    %268 = vector.extract_strided_slice %266 {offsets = [0, 0], sizes = [8, 16], strides = [1, 1]} : vector<8x32xf32> to vector<8x16xf32>
    %269 = vector.extract_strided_slice %256 {offsets = [0, 32], sizes = [8, 16], strides = [1, 1]} : vector<8x48xf32> to vector<8x16xf32>
    %270 = arith.mulf %268, %269 : vector<8x16xf32>
    %271 = arith.addf %267, %270 : vector<8x16xf32>
    %272 = math.tanh %271 : vector<8x16xf32>
    %273 = vector.extract_strided_slice %266 {offsets = [0, 16], sizes = [8, 16], strides = [1, 1]} : vector<8x32xf32> to vector<8x16xf32>
    %cst_47 = arith.constant 1.000000e+00 : f32
    %274 = vector.broadcast %cst_47 : f32 to vector<8x16xf32>
    %275 = arith.subf %274, %273 : vector<8x16xf32>
    %276 = arith.mulf %275, %272 : vector<8x16xf32>
    %277 = arith.mulf %273, %230 : vector<8x16xf32>
    %278 = arith.addf %276, %277 : vector<8x16xf32>
    %cst_48 = arith.constant dense<0.000000e+00> : vector<8x12xf32>
    %279 = tpu.matmul %278, %9, %cst_48 {dimension_numbers = #tpu.dot_dimension_numbers<[1], [0], [0], [1], [0, 0, 1, 1], [], []>} : vector<8x16xf32>, vector<16x12xf32>, vector<8x12xf32> -> vector<8x12xf32>
    %280 = vector.broadcast %10 : vector<1x12xf32> to vector<8x12xf32>
    %281 = arith.addf %279, %280 : vector<8x12xf32>
    %282 = vector.extract_strided_slice %281 {offsets = [0, 0], sizes = [8, 8], strides = [1, 1]} : vector<8x12xf32> to vector<8x8xf32>
    %283 = vector.extract_strided_slice %257 {offsets = [0, 0], sizes = [8, 8], strides = [1, 1]} : vector<8x12xf32> to vector<8x8xf32>
    %284 = arith.addf %282, %283 : vector<8x8xf32>
    %285 = arith.negf %284 : vector<8x8xf32>
    %286 = math.exp %285 : vector<8x8xf32>
    %cst_49 = arith.constant 1.000000e+00 : f32
    %287 = vector.broadcast %cst_49 : f32 to vector<8x8xf32>
    %288 = arith.addf %287, %286 : vector<8x8xf32>
    %289 = arith.divf %287, %288 : vector<8x8xf32>
    %290 = vector.extract_strided_slice %281 {offsets = [0, 8], sizes = [8, 4], strides = [1, 1]} : vector<8x12xf32> to vector<8x4xf32>
    %291 = vector.extract_strided_slice %289 {offsets = [0, 0], sizes = [8, 4], strides = [1, 1]} : vector<8x8xf32> to vector<8x4xf32>
    %292 = vector.extract_strided_slice %257 {offsets = [0, 8], sizes = [8, 4], strides = [1, 1]} : vector<8x12xf32> to vector<8x4xf32>
    %293 = arith.mulf %291, %292 : vector<8x4xf32>
    %294 = arith.addf %290, %293 : vector<8x4xf32>
    %295 = math.tanh %294 : vector<8x4xf32>
    %296 = vector.extract_strided_slice %289 {offsets = [0, 4], sizes = [8, 4], strides = [1, 1]} : vector<8x8xf32> to vector<8x4xf32>
    %cst_50 = arith.constant 1.000000e+00 : f32
    %297 = vector.broadcast %cst_50 : f32 to vector<8x4xf32>
    %298 = arith.subf %297, %296 : vector<8x4xf32>
    %299 = arith.mulf %298, %295 : vector<8x4xf32>
    %300 = arith.mulf %296, %253 : vector<8x4xf32>
    %301 = arith.addf %299, %300 : vector<8x4xf32>
    %302 = tpu.concatenate %278, %301, %13 in 1 : vector<8x16xf32>, vector<8x4xf32>, vector<8x1xf32> -> vector<8x21xf32>
    %cst_51 = arith.constant dense<0.000000e+00> : vector<8x60xf32>
    %303 = tpu.matmul %302, %6, %cst_51 {dimension_numbers = #tpu.dot_dimension_numbers<[1], [0], [0], [1], [0, 0, 1, 1], [], []>} : vector<8x21xf32>, vector<21x60xf32>, vector<8x60xf32> -> vector<8x60xf32>
    %304 = vector.extract_strided_slice %303 {offsets = [0, 0], sizes = [8, 48], strides = [1, 1]} : vector<8x60xf32> to vector<8x48xf32>
    %305 = vector.extract_strided_slice %303 {offsets = [0, 48], sizes = [8, 12], strides = [1, 1]} : vector<8x60xf32> to vector<8x12xf32>
    %306 = vector.extract_strided_slice %5 {offsets = [48, 0], sizes = [8, 48], strides = [1, 1]} : vector<64x48xf32> to vector<8x48xf32>
    %307 = vector.extract_strided_slice %306 {offsets = [0, 0], sizes = [8, 32], strides = [1, 1]} : vector<8x48xf32> to vector<8x32xf32>
    %308 = vector.extract_strided_slice %304 {offsets = [0, 0], sizes = [8, 32], strides = [1, 1]} : vector<8x48xf32> to vector<8x32xf32>
    %309 = arith.addf %307, %308 : vector<8x32xf32>
    %310 = arith.negf %309 : vector<8x32xf32>
    %311 = math.exp %310 : vector<8x32xf32>
    %cst_52 = arith.constant 1.000000e+00 : f32
    %312 = vector.broadcast %cst_52 : f32 to vector<8x32xf32>
    %313 = arith.addf %312, %311 : vector<8x32xf32>
    %314 = arith.divf %312, %313 : vector<8x32xf32>
    %315 = vector.extract_strided_slice %306 {offsets = [0, 32], sizes = [8, 16], strides = [1, 1]} : vector<8x48xf32> to vector<8x16xf32>
    %316 = vector.extract_strided_slice %314 {offsets = [0, 0], sizes = [8, 16], strides = [1, 1]} : vector<8x32xf32> to vector<8x16xf32>
    %317 = vector.extract_strided_slice %304 {offsets = [0, 32], sizes = [8, 16], strides = [1, 1]} : vector<8x48xf32> to vector<8x16xf32>
    %318 = arith.mulf %316, %317 : vector<8x16xf32>
    %319 = arith.addf %315, %318 : vector<8x16xf32>
    %320 = math.tanh %319 : vector<8x16xf32>
    %321 = vector.extract_strided_slice %314 {offsets = [0, 16], sizes = [8, 16], strides = [1, 1]} : vector<8x32xf32> to vector<8x16xf32>
    %cst_53 = arith.constant 1.000000e+00 : f32
    %322 = vector.broadcast %cst_53 : f32 to vector<8x16xf32>
    %323 = arith.subf %322, %321 : vector<8x16xf32>
    %324 = arith.mulf %323, %320 : vector<8x16xf32>
    %325 = arith.mulf %321, %278 : vector<8x16xf32>
    %326 = arith.addf %324, %325 : vector<8x16xf32>
    %cst_54 = arith.constant dense<0.000000e+00> : vector<8x12xf32>
    %327 = tpu.matmul %326, %9, %cst_54 {dimension_numbers = #tpu.dot_dimension_numbers<[1], [0], [0], [1], [0, 0, 1, 1], [], []>} : vector<8x16xf32>, vector<16x12xf32>, vector<8x12xf32> -> vector<8x12xf32>
    %328 = vector.broadcast %10 : vector<1x12xf32> to vector<8x12xf32>
    %329 = arith.addf %327, %328 : vector<8x12xf32>
    %330 = vector.extract_strided_slice %329 {offsets = [0, 0], sizes = [8, 8], strides = [1, 1]} : vector<8x12xf32> to vector<8x8xf32>
    %331 = vector.extract_strided_slice %305 {offsets = [0, 0], sizes = [8, 8], strides = [1, 1]} : vector<8x12xf32> to vector<8x8xf32>
    %332 = arith.addf %330, %331 : vector<8x8xf32>
    %333 = arith.negf %332 : vector<8x8xf32>
    %334 = math.exp %333 : vector<8x8xf32>
    %cst_55 = arith.constant 1.000000e+00 : f32
    %335 = vector.broadcast %cst_55 : f32 to vector<8x8xf32>
    %336 = arith.addf %335, %334 : vector<8x8xf32>
    %337 = arith.divf %335, %336 : vector<8x8xf32>
    %338 = vector.extract_strided_slice %329 {offsets = [0, 8], sizes = [8, 4], strides = [1, 1]} : vector<8x12xf32> to vector<8x4xf32>
    %339 = vector.extract_strided_slice %337 {offsets = [0, 0], sizes = [8, 4], strides = [1, 1]} : vector<8x8xf32> to vector<8x4xf32>
    %340 = vector.extract_strided_slice %305 {offsets = [0, 8], sizes = [8, 4], strides = [1, 1]} : vector<8x12xf32> to vector<8x4xf32>
    %341 = arith.mulf %339, %340 : vector<8x4xf32>
    %342 = arith.addf %338, %341 : vector<8x4xf32>
    %343 = math.tanh %342 : vector<8x4xf32>
    %344 = vector.extract_strided_slice %337 {offsets = [0, 4], sizes = [8, 4], strides = [1, 1]} : vector<8x8xf32> to vector<8x4xf32>
    %cst_56 = arith.constant 1.000000e+00 : f32
    %345 = vector.broadcast %cst_56 : f32 to vector<8x4xf32>
    %346 = arith.subf %345, %344 : vector<8x4xf32>
    %347 = arith.mulf %346, %343 : vector<8x4xf32>
    %348 = arith.mulf %344, %301 : vector<8x4xf32>
    %349 = arith.addf %347, %348 : vector<8x4xf32>
    %350 = tpu.concatenate %326, %349, %13 in 1 : vector<8x16xf32>, vector<8x4xf32>, vector<8x1xf32> -> vector<8x21xf32>
    %cst_57 = arith.constant dense<0.000000e+00> : vector<8x60xf32>
    %351 = tpu.matmul %350, %6, %cst_57 {dimension_numbers = #tpu.dot_dimension_numbers<[1], [0], [0], [1], [0, 0, 1, 1], [], []>} : vector<8x21xf32>, vector<21x60xf32>, vector<8x60xf32> -> vector<8x60xf32>
    %352 = vector.extract_strided_slice %351 {offsets = [0, 0], sizes = [8, 48], strides = [1, 1]} : vector<8x60xf32> to vector<8x48xf32>
    %353 = vector.extract_strided_slice %351 {offsets = [0, 48], sizes = [8, 12], strides = [1, 1]} : vector<8x60xf32> to vector<8x12xf32>
    %354 = vector.extract_strided_slice %5 {offsets = [56, 0], sizes = [8, 48], strides = [1, 1]} : vector<64x48xf32> to vector<8x48xf32>
    %355 = vector.extract_strided_slice %354 {offsets = [0, 0], sizes = [8, 32], strides = [1, 1]} : vector<8x48xf32> to vector<8x32xf32>
    %356 = vector.extract_strided_slice %352 {offsets = [0, 0], sizes = [8, 32], strides = [1, 1]} : vector<8x48xf32> to vector<8x32xf32>
    %357 = arith.addf %355, %356 : vector<8x32xf32>
    %358 = arith.negf %357 : vector<8x32xf32>
    %359 = math.exp %358 : vector<8x32xf32>
    %cst_58 = arith.constant 1.000000e+00 : f32
    %360 = vector.broadcast %cst_58 : f32 to vector<8x32xf32>
    %361 = arith.addf %360, %359 : vector<8x32xf32>
    %362 = arith.divf %360, %361 : vector<8x32xf32>
    %363 = vector.extract_strided_slice %354 {offsets = [0, 32], sizes = [8, 16], strides = [1, 1]} : vector<8x48xf32> to vector<8x16xf32>
    %364 = vector.extract_strided_slice %362 {offsets = [0, 0], sizes = [8, 16], strides = [1, 1]} : vector<8x32xf32> to vector<8x16xf32>
    %365 = vector.extract_strided_slice %352 {offsets = [0, 32], sizes = [8, 16], strides = [1, 1]} : vector<8x48xf32> to vector<8x16xf32>
    %366 = arith.mulf %364, %365 : vector<8x16xf32>
    %367 = arith.addf %363, %366 : vector<8x16xf32>
    %368 = math.tanh %367 : vector<8x16xf32>
    %369 = vector.extract_strided_slice %362 {offsets = [0, 16], sizes = [8, 16], strides = [1, 1]} : vector<8x32xf32> to vector<8x16xf32>
    %cst_59 = arith.constant 1.000000e+00 : f32
    %370 = vector.broadcast %cst_59 : f32 to vector<8x16xf32>
    %371 = arith.subf %370, %369 : vector<8x16xf32>
    %372 = arith.mulf %371, %368 : vector<8x16xf32>
    %373 = arith.mulf %369, %326 : vector<8x16xf32>
    %374 = arith.addf %372, %373 : vector<8x16xf32>
    %cst_60 = arith.constant dense<0.000000e+00> : vector<8x12xf32>
    %375 = tpu.matmul %374, %9, %cst_60 {dimension_numbers = #tpu.dot_dimension_numbers<[1], [0], [0], [1], [0, 0, 1, 1], [], []>} : vector<8x16xf32>, vector<16x12xf32>, vector<8x12xf32> -> vector<8x12xf32>
    %376 = vector.broadcast %10 : vector<1x12xf32> to vector<8x12xf32>
    %377 = arith.addf %375, %376 : vector<8x12xf32>
    %378 = vector.extract_strided_slice %377 {offsets = [0, 0], sizes = [8, 8], strides = [1, 1]} : vector<8x12xf32> to vector<8x8xf32>
    %379 = vector.extract_strided_slice %353 {offsets = [0, 0], sizes = [8, 8], strides = [1, 1]} : vector<8x12xf32> to vector<8x8xf32>
    %380 = arith.addf %378, %379 : vector<8x8xf32>
    %381 = arith.negf %380 : vector<8x8xf32>
    %382 = math.exp %381 : vector<8x8xf32>
    %cst_61 = arith.constant 1.000000e+00 : f32
    %383 = vector.broadcast %cst_61 : f32 to vector<8x8xf32>
    %384 = arith.addf %383, %382 : vector<8x8xf32>
    %385 = arith.divf %383, %384 : vector<8x8xf32>
    %386 = vector.extract_strided_slice %377 {offsets = [0, 8], sizes = [8, 4], strides = [1, 1]} : vector<8x12xf32> to vector<8x4xf32>
    %387 = vector.extract_strided_slice %385 {offsets = [0, 0], sizes = [8, 4], strides = [1, 1]} : vector<8x8xf32> to vector<8x4xf32>
    %388 = vector.extract_strided_slice %353 {offsets = [0, 8], sizes = [8, 4], strides = [1, 1]} : vector<8x12xf32> to vector<8x4xf32>
    %389 = arith.mulf %387, %388 : vector<8x4xf32>
    %390 = arith.addf %386, %389 : vector<8x4xf32>
    %391 = math.tanh %390 : vector<8x4xf32>
    %392 = vector.extract_strided_slice %385 {offsets = [0, 4], sizes = [8, 4], strides = [1, 1]} : vector<8x8xf32> to vector<8x4xf32>
    %cst_62 = arith.constant 1.000000e+00 : f32
    %393 = vector.broadcast %cst_62 : f32 to vector<8x4xf32>
    %394 = arith.subf %393, %392 : vector<8x4xf32>
    %395 = arith.mulf %394, %391 : vector<8x4xf32>
    %396 = arith.mulf %392, %349 : vector<8x4xf32>
    %397 = arith.addf %395, %396 : vector<8x4xf32>
    %398 = tpu.concatenate %61, %109, %157, %205, %253, %301, %349, %397 in 0 : vector<8x4xf32>, vector<8x4xf32>, vector<8x4xf32>, vector<8x4xf32>, vector<8x4xf32>, vector<8x4xf32>, vector<8x4xf32>, vector<8x4xf32> -> vector<64x4xf32>
    %c0_63 = arith.constant 0 : index
    %c0_64 = arith.constant 0 : index
    %399 = vector.load %arg6[%c0_63, %c0_64] : memref<4x2xf32, #tpu.memory_space<vmem>>, vector<4x2xf32>
    %cst_65 = arith.constant dense<0.000000e+00> : vector<64x2xf32>
    %400 = tpu.matmul %398, %399, %cst_65 {dimension_numbers = #tpu.dot_dimension_numbers<[1], [0], [0], [1], [0, 0, 1, 1], [], []>} : vector<64x4xf32>, vector<4x2xf32>, vector<64x2xf32> -> vector<64x2xf32>
    %c0_66 = arith.constant 0 : index
    %c0_67 = arith.constant 0 : index
    %401 = vector.load %arg7[%c0_66, %c0_67] : memref<1x2xf32, #tpu.memory_space<vmem>>, vector<1x2xf32>
    %402 = vector.broadcast %401 : vector<1x2xf32> to vector<64x2xf32>
    %403 = arith.addf %400, %402 : vector<64x2xf32>
    %c0_68 = arith.constant 0 : index
    %c0_69 = arith.constant 0 : index
    %404 = vector.load %arg8[%c0_68, %c0_69] : memref<64x2xf32, #tpu.memory_space<vmem>>, vector<64x2xf32>
    tpu.vector_store %arg8[%c0_68, %c0_69], %403 {strides = array<i32>} : memref<64x2xf32, #tpu.memory_space<vmem>>, vector<64x2xf32>,
    return
  }
}

</mosaic_0001>

<bundles_post_ra>
// kernel: tpu_custom_call.1
= control target key start
LH: loop header
LB: loop body
LE: loop exit
PB: predicated region body
PF: predicated region fallthrough
CT: control target
= control target key end

     0   :  { %vm126_vm0 = vcmask 1044480   ;;  %vm67_vm1 = vcmask 1042432   ;;  %vm42_vm2 = vcmask 23552   ;;  %vm120_vm3 = vcmask 162816   ;;  %s1474_s15 = smov 72   ;;  %s1475_s18 = smov 32   ;;  %s1898_s3 = inlined_call_operand.vmem [shape: f32[21,60], index: 3, kind: input, shape index: {}]   ;;  %s1899_s1 = inlined_call_operand.vmem [shape: f32[3,48], index: 1, kind: input, shape index: {}]   ;;  %s1900_s0 = inlined_call_operand.vmem [shape: f32[64,3], index: 0, kind: input, shape index: {}]   ;;  %s1901_s2 = inlined_call_operand.vmem [shape: f32[1,48], index: 2, kind: input, shape index: {}]   ;;  %s1902_s4 = inlined_call_operand.vmem [shape: f32[16,12], index: 4, kind: input, shape index: {}]   ;;  %s1903_s5 = inlined_call_operand.vmem [shape: f32[1,12], index: 5, kind: input, shape index: {}]   ;;  %s1904_s6 = inlined_call_operand.vmem [shape: f32[4,2], index: 6, kind: input, shape index: {}]   ;;  %s1905_s7 = inlined_call_operand.vmem [shape: f32[1,2], index: 7, kind: input, shape index: {}]   ;;  %s1906_s8 = inlined_call_operand.vmem [shape: f32[64,2], index: 8, kind: output, shape index: {}]  }
   0x1   :  { %v1528_v0 = vld [vmem:[%s1898_s3 + $0x10] sm:$0x1f]  ;;  %v37_v1 = vld [vmem:[%s1899_s1] sm:$0x7]  ;;  %v1536_v2 = vld [vmem:[%s1898_s3 + $0x8] sm:$0xff]  ;;  %v1471_v5 = vmov 1.0  }
   0x2   :  { %1310 = vmatpush.msk.msra.mxu1 %vm126_vm0, %v1528_v0  ;;  %1301 = vmatpush.msk.msra.mxu0 %vm67_vm1, %v37_v1  ;;  %v29_v3 = vld [vmem:[%s1900_s0] sm:$0xff]  ;;  %v121_v6 = vsel %vm120_vm3, 0.0, %v1471_v5  ;;  %vm122_vm4 = vcmask 171008   ;;  %s1472_s1 = smov 80   ;;  %s1476_s19 = smov 112   ;;  %v1575_v30 = vld [vmem:[%s1902_s4 + $0x8] sm:$0xff] }
   0x3   :  { %1302 = vmatmul.msk.f32.vlgmr.msra.gmra.mxu0 %vm42_vm2, %v29_v3  ;;  %v1547_v4 = vld [vmem:[%s1898_s3] sm:$0xff]  ;;  %1315 = vmatpush.msk.msra.mxu3 %vm126_vm0, %v1528_v0  ;;  %s1473_s3 = smov 96   ;;  %vm195_vm9 = vcmask 130048   ;;  %s1477_s25 = smov 8   ;;  %v30_v5 = vld [vmem:[%s1900_s0 + $0x8] sm:$0xff] }
   0x4   :  { %144 = vmatpush.msra.mxu1 %v1536_v2  ;;  %v1567_v8 = vld [vmem:[%s1901_s2] ss:$0 sm:$0xff]  ;;  %212 = vmatpush.msra.mxu2 %v1575_v30  ;;  %s1478_s26 = smov 124   ;;  %s1479_s27 = smov 12  }
   0x5   :  { %283 = vmatpush.msra.mxu3 %v1536_v2  ;;  %v1580_v31 = vld [vmem:[%s1902_s4] sm:$0xff] }
   0x6   :  { %145 = vmatpush.msra.mxu1 %v1547_v4  ;;  %213 = vmatpush.msra.mxu2 %v1580_v31  ;;  %v1602_v38 = vld [vmem:[%s1903_s5] ss:$0 sm:$0xff] }
   0x7   :  { %1311 = vmatmul.msk.f32.vlgmr.msra.gmra.mxu1 %vm122_vm4, %v121_v6  ;;  %284 = vmatpush.msra.mxu3 %v1547_v4 }
   0x8   :  { %1320 = vmatpush.msk.msrb.mxu1 %vm126_vm0, %v1528_v0  ;;  %347 = vmatpush.msrb.mxu2 %v1575_v30 }
   0x9   :  { %482 = vmatpush.msrb.mxu3 %v1575_v30 }
   0xa   :  { %418 = vmatpush.msrb.mxu1 %v1536_v2  ;;  %348 = vmatpush.msrb.mxu2 %v1580_v31 }
   0xb   :  { %483 = vmatpush.msrb.mxu3 %v1580_v31  ;;  %1303 = vmatmul.msk.f32.gmra.mxu0 %vm42_vm2, %v30_v5 }
   0xc   :  { %419 = vmatpush.msrb.mxu1 %v1547_v4 }
   0xe   :  { %617 = vmatpush.msra.mxu1 %v1575_v30 }
  0x10   :  { %618 = vmatpush.msra.mxu1 %v1580_v31 }
  0x80   :  { %v88_v9 = vpop.f32.mrf.mxu0 }
  0x81   :  { %v89_v10 = vadd.f32 %v1567_v8, %v88_v9 }
  0x84   :  { %v147_v7 = vpop.f32.mrf.mxu1 }
  0x85   :  { %218 = vrot.lane.b32.xlu2 %v147_v7, %s1472_s1  ;;  %171 = vrot.lane.b32.xlu0 %v147_v7, %s1473_s3  ;;  %v150_v11 = vadd.f32 %v147_v7, %v89_v10 }
  0x87   :  { %v1312_v12 = vmul.f32 -1.442695, %v150_v11 }
  0x88   :  { %v91_v11 = vpop.f32.mrf.mxu0 }
  0x89   :  { %1373 = vpow2.f32 %v1312_v12  ;;  %v92_v12 = vadd.f32 %v1567_v8, %v91_v11 }
  0x8d   :  { %241 = vrot.lane.b32.xlu2 %v147_v7, %s1474_s15 }
  0x8f   :  { %v1374_v13 = vpop.eup %1373 }
  0x90   :  { %v154_v14 = vadd.f32 1.0, %v1374_v13 }
  0x92   :  { %1375 = vrcp.f32 %v154_v14  ;;  %v166_v20 = vand.u32 2147483648, %v154_v14  ;;  %vm160_vm6 = vweird.f32 %v154_v14  ;;  %v164_v21 = vand.u32 2147483647, %v154_v14 }
  0x94   :  { %v167_v23 = vor.u32 1.1754944e-38, %v166_v20  ;;  %vm165_vm8 = vcmp.eq.f32.partialorder %v164_v21, 8.507059e+37 }
  0x98   :  { %v1376_v15 = vpop.eup %1375 }
  0x99   :  { %v156_v16 = vmul.f32 %v1376_v15, %v154_v14  ;;  %vm161_vm5 = vweird.f32 %v1376_v15 }
  0x9a   :  { %vm162_vm7 = vmor %vm160_vm6, %vm161_vm5 }
  0x9b   :  { %v157_v17 = vsub.f32 1.0, %v156_v16 }
  0x9d   :  { %v158_v18 = vmul.f32 %v1376_v15, %v157_v17 }
  0x9f   :  { %v159_v19 = vadd.f32 %v1376_v15, %v158_v18 }
  0xa1   :  { %v163_v22 = vsel %vm162_vm7, %v1376_v15, %v159_v19 }
  0xa2   :  { %v168_v25 = vsel %vm165_vm8, %v167_v23, %v163_v22 }
  0xa3   :  { %v181_v32 = vsub.f32 1.0, %v168_v25  ;;  %v187_v34 = vmul.f32 0.0, %v168_v25 }
  0xdf   :  { %v219_v41 = vpop.permute.xlu2 %218 }
  0xe7   :  { %v242_v55 = vpop.permute.xlu2 %241 }
  0xf7   :  { %v172_v24 = vpop.permute.xlu0 %171 }
  0xf8   :  { %v174_v26 = vmul.f32 %v172_v24, %v168_v25 }
  0xfa   :  { %176 = vrot.lane.b32.xlu0 %v174_v26, %s1475_s18 }
 0x16c   :  { %v177_v27 = vpop.permute.xlu0 %176 }
 0x16d   :  { %v179_v28 = vadd.f32 %v177_v27, %v89_v10 }
 0x16f   :  { %1377 = vtanh.f32 %v179_v28 }
 0x175   :  { %v1378_v29 = vpop.eup %1377 }
 0x176   :  { %183 = vrot.lane.b32.xlu1 %v1378_v29, %s1476_s19 }
 0x1e8   :  { %v184_v33 = vpop.permute.xlu1 %183 }
 0x1e9   :  { %v186_v35 = vmul.f32 %v184_v33, %v181_v32 }
 0x1eb   :  { %v1590_v36 = vadd.f32 %v187_v34, %v186_v35 }
 0x1ed   :  { %193 = vrot.lane.b32.xlu1 %v1590_v36, %s1476_s19 }
 0x25f   :  { %v194_v37 = vpop.permute.xlu1 %193 }
 0x260   :  { %1313 = vmatmul.msk.f32.vlgmr.msra.gmra.mxu2 %vm195_vm9, %v194_v37 }
 0x261   :  { %1325 = vmatpush.msk.msra.mxu2 %vm126_vm0, %v1528_v0 }
 0x263   :  { %553 = vmatpush.msra.mxu2 %v1536_v2 }
 0x265   :  { %554 = vmatpush.msra.mxu2 %v1547_v4 }
 0x2e3   :  { %v215_v39 = vpop.f32.mrf.mxu2 }
 0x2e4   :  { %v216_v40 = vadd.f32 %v1602_v38, %v215_v39 }
 0x2e6   :  { %v221_v42 = vadd.f32 %v219_v41, %v216_v40 }
 0x2e8   :  { %v1314_v43 = vmul.f32 -1.442695, %v221_v42 }
 0x2ea   :  { %1379 = vpow2.f32 %v1314_v43 }
 0x2f0   :  { %v1380_v44 = vpop.eup %1379 }
 0x2f1   :  { %v225_v45 = vadd.f32 1.0, %v1380_v44 }
 0x2f3   :  { %1381 = vrcp.f32 %v225_v45  ;;  %v237_v49 = vand.u32 2147483648, %v225_v45  ;;  %v235_v51 = vand.u32 2147483647, %v225_v45  ;;  %vm231_vm11 = vweird.f32 %v225_v45 }
 0x2f5   :  { %v238_v53 = vor.u32 1.1754944e-38, %v237_v49  ;;  %vm236_vm13 = vcmp.eq.f32.partialorder %v235_v51, 8.507059e+37 }
 0x2f9   :  { %v1382_v46 = vpop.eup %1381 }
 0x2fa   :  { %v227_v47 = vmul.f32 %v1382_v46, %v225_v45  ;;  %vm232_vm10 = vweird.f32 %v1382_v46 }
 0x2fb   :  { %vm233_vm12 = vmor %vm231_vm11, %vm232_vm10 }
 0x2fc   :  { %v228_v48 = vsub.f32 1.0, %v227_v47 }
 0x2fe   :  { %v229_v50 = vmul.f32 %v1382_v46, %v228_v48 }
 0x300   :  { %v230_v52 = vadd.f32 %v1382_v46, %v229_v50 }
 0x302   :  { %v234_v54 = vsel %vm233_vm12, %v1382_v46, %v230_v52 }
 0x303   :  { %v239_v56 = vsel %vm236_vm13, %v238_v53, %v234_v54 }
 0x304   :  { %v244_v57 = vmul.f32 %v242_v55, %v239_v56  ;;  %v251_v61 = vsub.f32 1.0, %v239_v56  ;;  %v257_v63 = vmul.f32 0.0, %v239_v56 }
 0x306   :  { %246 = vrot.lane.b32.xlu0 %v244_v57, %s1477_s25 }
 0x378   :  { %v247_v58 = vpop.permute.xlu0 %246 }
 0x379   :  { %v249_v59 = vadd.f32 %v247_v58, %v216_v40 }
 0x37b   :  { %1383 = vtanh.f32 %v249_v59 }
 0x381   :  { %v1384_v60 = vpop.eup %1383 }
 0x382   :  { %253 = vrot.lane.b32.xlu1 %v1384_v60, %s1478_s26 }
 0x3f4   :  { %v254_v62 = vpop.permute.xlu1 %253 }
 0x3f5   :  { %v256_v1 = vmul.f32 %v254_v62, %v251_v61 }
 0x3f7   :  { %v1607_v3 = vadd.f32 %v257_v63, %v256_v1 }
 0x3f9   :  { %261 = vrot.lane.b32.xlu2 %v1607_v3, %s1479_s27 }
 0x453   :  { %v262_v6 = vpop.permute.xlu2 %261 }
 0x454   :  { %v264_v7 = vsel %vm195_vm9, %v194_v37, %v262_v6 }
 0x455   :  { %v265_v9 = vsel %vm120_vm3, %v264_v7, 1.0 }
 0x456   :  { %1316 = vmatmul.msk.f32.vlgmr.msra.gmra.mxu3 %vm122_vm4, %v265_v9  ;;  %v31_v9 = vld [vmem:[%s1900_s0 + $0x10] sm:$0xff] }
 0x457   :  { %1330 = vmatpush.msk.msra.mxu3 %vm126_vm0, %v1528_v0  ;;  %1304 = vmatmul.msk.f32.gmra.mxu0 %vm42_vm2, %v31_v9 }
 0x459   :  { %688 = vmatpush.msra.mxu3 %v1536_v2 }
 0x45b   :  { %689 = vmatpush.msra.mxu3 %v1547_v4 }
 0x4d9   :  { %v286_v10 = vpop.f32.mrf.mxu3 }
 0x4da   :  { %310 = vrot.lane.b32.xlu0 %v286_v10, %s1473_s3  ;;  %v289_v13 = vadd.f32 %v286_v10, %v92_v12 }
 0x4dc   :  { %v1317_v14 = vmul.f32 -1.442695, %v289_v13 }
 0x4de   :  { %1385 = vpow2.f32 %v1317_v14  ;;  %v94_v14 = vpop.f32.mrf.mxu0 }
 0x4e4   :  { %v1386_v15 = vpop.eup %1385 }
 0x4e5   :  { %v293_v16 = vadd.f32 1.0, %v1386_v15  ;;  %v95_v15 = vadd.f32 %v1567_v8, %v94_v14 }
 0x4e7   :  { %1387 = vrcp.f32 %v293_v16  ;;  %v305_v22 = vand.u32 2147483648, %v293_v16  ;;  %vm299_vm15 = vweird.f32 %v293_v16  ;;  %v303_v23 = vand.u32 2147483647, %v293_v16 }
 0x4e9   :  { %v306_v25 = vor.u32 1.1754944e-38, %v305_v22  ;;  %vm304_vm5 = vcmp.eq.f32.partialorder %v303_v23, 8.507059e+37 }
 0x4ed   :  { %v1388_v17 = vpop.eup %1387 }
 0x4ee   :  { %v295_v18 = vmul.f32 %v1388_v17, %v293_v16  ;;  %vm300_vm14 = vweird.f32 %v1388_v17 }
 0x4ef   :  { %vm301_vm1 = vmor %vm299_vm15, %vm300_vm14 }
 0x4f0   :  { %v296_v19 = vsub.f32 1.0, %v295_v18 }
 0x4f2   :  { %v297_v20 = vmul.f32 %v1388_v17, %v296_v19 }
 0x4f4   :  { %v298_v21 = vadd.f32 %v1388_v17, %v297_v20 }
 0x4f6   :  { %v302_v24 = vsel %vm301_vm1, %v1388_v17, %v298_v21 }
 0x4f7   :  { %v307_v27 = vsel %vm304_vm5, %v306_v25, %v302_v24 }
 0x4f8   :  { %v320_v34 = vsub.f32 1.0, %v307_v27  ;;  %v326_v37 = vmul.f32 %v307_v27, %v1590_v36 }
 0x54c   :  { %v311_v26 = vpop.permute.xlu0 %310 }
 0x54d   :  { %v313_v28 = vmul.f32 %v311_v26, %v307_v27 }
 0x54f   :  { %315 = vrot.lane.b32.xlu1 %v313_v28, %s1475_s18 }
 0x557   :  { %353 = vrot.lane.b32.xlu1 %v286_v10, %s1472_s1 }
 0x5c1   :  { %v316_v29 = vpop.permute.xlu1 %315 }
 0x5c2   :  { %v318_v32 = vadd.f32 %v316_v29, %v92_v12 }
 0x5c4   :  { %1389 = vtanh.f32 %v318_v32 }
 0x5c9   :  { %v354_v44 = vpop.permute.xlu1 %353 }
 0x5ca   :  { %v1390_v33 = vpop.eup %1389 }
 0x5cb   :  { %322 = vrot.lane.b32.xlu2 %v1390_v33, %s1476_s19 }
 0x5d3   :  { %376 = vrot.lane.b32.xlu2 %v286_v10, %s1474_s15 }
 0x625   :  { %v323_v35 = vpop.permute.xlu2 %322 }
 0x626   :  { %v325_v39 = vmul.f32 %v323_v35, %v320_v34 }
 0x628   :  { %v1629_v40 = vadd.f32 %v326_v37, %v325_v39 }
 0x62a   :  { %329 = vrot.lane.b32.xlu0 %v1629_v40, %s1476_s19 }
 0x62d   :  { %v377_v57 = vpop.permute.xlu2 %376 }
 0x69c   :  { %v330_v41 = vpop.permute.xlu0 %329 }
 0x69d   :  { %1318 = vmatmul.msk.f32.vlgmr.msrb.gmra.mxu2 %vm195_vm9, %v330_v41 }
 0x69e   :  { %752 = vmatpush.msrb.mxu2 %v1575_v30 }
 0x6a0   :  { %753 = vmatpush.msrb.mxu2 %v1580_v31 }
 0x720   :  { %v350_v42 = vpop.f32.mrf.mxu2 }
 0x721   :  { %v351_v43 = vadd.f32 %v1602_v38, %v350_v42 }
 0x723   :  { %v356_v45 = vadd.f32 %v354_v44, %v351_v43 }
 0x725   :  { %v1319_v46 = vmul.f32 -1.442695, %v356_v45 }
 0x727   :  { %1391 = vpow2.f32 %v1319_v46 }
 0x72d   :  { %v1392_v36 = vpop.eup %1391 }
 0x72e   :  { %v360_v47 = vadd.f32 1.0, %v1392_v36 }
 0x730   :  { %1393 = vrcp.f32 %v360_v47  ;;  %v372_v51 = vand.u32 2147483648, %v360_v47  ;;  %v370_v53 = vand.u32 2147483647, %v360_v47  ;;  %vm366_vm7 = vweird.f32 %v360_v47 }
 0x732   :  { %v373_v55 = vor.u32 1.1754944e-38, %v372_v51  ;;  %vm371_vm10 = vcmp.eq.f32.partialorder %v370_v53, 8.507059e+37 }
 0x736   :  { %v1394_v48 = vpop.eup %1393 }
 0x737   :  { %v362_v49 = vmul.f32 %v1394_v48, %v360_v47  ;;  %vm367_vm6 = vweird.f32 %v1394_v48 }
 0x738   :  { %vm368_vm8 = vmor %vm366_vm7, %vm367_vm6 }
 0x739   :  { %v363_v50 = vsub.f32 1.0, %v362_v49 }
 0x73b   :  { %v364_v52 = vmul.f32 %v1394_v48, %v363_v50 }
 0x73d   :  { %v365_v54 = vadd.f32 %v1394_v48, %v364_v52 }
 0x73f   :  { %v369_v56 = vsel %vm368_vm8, %v1394_v48, %v365_v54 }
 0x740   :  { %v374_v58 = vsel %vm371_vm10, %v373_v55, %v369_v56 }
 0x741   :  { %v379_v59 = vmul.f32 %v377_v57, %v374_v58  ;;  %v386_v63 = vsub.f32 1.0, %v374_v58  ;;  %v392_v5 = vmul.f32 %v374_v58, %v1607_v3 }
 0x743   :  { %381 = vrot.lane.b32.xlu0 %v379_v59, %s1477_s25 }
 0x7b5   :  { %v382_v60 = vpop.permute.xlu0 %381 }
 0x7b6   :  { %v384_v61 = vadd.f32 %v382_v60, %v351_v43 }
 0x7b8   :  { %1395 = vtanh.f32 %v384_v61 }
 0x7be   :  { %v1396_v62 = vpop.eup %1395 }
 0x7bf   :  { %388 = vrot.lane.b32.xlu1 %v1396_v62, %s1478_s26 }
 0x831   :  { %v389_v1 = vpop.permute.xlu1 %388 }
 0x832   :  { %v391_v6 = vmul.f32 %v389_v1, %v386_v63 }
 0x834   :  { %v1640_v7 = vadd.f32 %v392_v5, %v391_v6 }
 0x836   :  { %396 = vrot.lane.b32.xlu2 %v1640_v7, %s1479_s27 }
 0x890   :  { %v397_v10 = vpop.permute.xlu2 %396 }
 0x891   :  { %v399_v11 = vsel %vm195_vm9, %v330_v41, %v397_v10 }
 0x892   :  { %v400_v12 = vsel %vm120_vm3, %v399_v11, 1.0 }
 0x893   :  { %1321 = vmatmul.msk.f32.vlgmr.msrb.gmra.mxu1 %vm122_vm4, %v400_v12 }
 0x894   :  { %1335 = vmatpush.msk.msrb.mxu1 %vm126_vm0, %v1528_v0 }
 0x896   :  { %823 = vmatpush.msrb.mxu1 %v1536_v2 }
 0x898   :  { %824 = vmatpush.msrb.mxu1 %v1547_v4 }
 0x910   :  { %v421_v13 = vpop.f32.mrf.mxu1 }
 0x911   :  { %445 = vrot.lane.b32.xlu0 %v421_v13, %s1473_s3  ;;  %v424_v16 = vadd.f32 %v421_v13, %v95_v15 }
 0x913   :  { %v1322_v17 = vmul.f32 -1.442695, %v424_v16 }
 0x915   :  { %1397 = vpow2.f32 %v1322_v17 }
 0x91b   :  { %v1398_v18 = vpop.eup %1397 }
 0x91c   :  { %v428_v19 = vadd.f32 1.0, %v1398_v18 }
 0x91e   :  { %1399 = vrcp.f32 %v428_v19  ;;  %v440_v25 = vand.u32 2147483648, %v428_v19  ;;  %vm434_vm12 = vweird.f32 %v428_v19  ;;  %v438_v26 = vand.u32 2147483647, %v428_v19 }
 0x920   :  { %v441_v28 = vor.u32 1.1754944e-38, %v440_v25  ;;  %vm439_vm14 = vcmp.eq.f32.partialorder %v438_v26, 8.507059e+37 }
 0x924   :  { %v1400_v20 = vpop.eup %1399 }
 0x925   :  { %v430_v21 = vmul.f32 %v1400_v20, %v428_v19  ;;  %vm435_vm11 = vweird.f32 %v1400_v20 }
 0x926   :  { %vm436_vm13 = vmor %vm434_vm12, %vm435_vm11 }
 0x927   :  { %v431_v22 = vsub.f32 1.0, %v430_v21 }
 0x929   :  { %v432_v23 = vmul.f32 %v1400_v20, %v431_v22 }
 0x92b   :  { %v433_v24 = vadd.f32 %v1400_v20, %v432_v23 }
 0x92d   :  { %v437_v27 = vsel %vm436_vm13, %v1400_v20, %v433_v24 }
 0x92e   :  { %v442_v32 = vsel %vm439_vm14, %v441_v28, %v437_v27 }
 0x92f   :  { %v455_v39 = vsub.f32 1.0, %v442_v32  ;;  %v461_v42 = vmul.f32 %v442_v32, %v1629_v40 }
 0x983   :  { %v446_v29 = vpop.permute.xlu0 %445 }
 0x984   :  { %v448_v33 = vmul.f32 %v446_v29, %v442_v32 }
 0x986   :  { %450 = vrot.lane.b32.xlu1 %v448_v33, %s1475_s18 }
 0x98e   :  { %488 = vrot.lane.b32.xlu1 %v421_v13, %s1472_s1 }
 0x9f8   :  { %v451_v34 = vpop.permute.xlu1 %450 }
 0x9f9   :  { %v453_v35 = vadd.f32 %v451_v34, %v95_v15 }
 0x9fb   :  { %1401 = vtanh.f32 %v453_v35 }
 0xa00   :  { %v489_v47 = vpop.permute.xlu1 %488 }
 0xa01   :  { %v1402_v37 = vpop.eup %1401 }
 0xa02   :  { %457 = vrot.lane.b32.xlu2 %v1402_v37, %s1476_s19 }
 0xa0a   :  { %511 = vrot.lane.b32.xlu2 %v421_v13, %s1474_s15  ;;  %v32_v13 = vld [vmem:[%s1900_s0 + $0x18] sm:$0xff] }
 0xa0b   :  { %1305 = vmatmul.msk.f32.gmra.mxu0 %vm42_vm2, %v32_v13 }
 0xa5c   :  { %v458_v41 = vpop.permute.xlu2 %457 }
 0xa5d   :  { %v460_v43 = vmul.f32 %v458_v41, %v455_v39 }
 0xa5f   :  { %v1662_v44 = vadd.f32 %v461_v42, %v460_v43 }
 0xa61   :  { %464 = vrot.lane.b32.xlu0 %v1662_v44, %s1476_s19 }
 0xa64   :  { %v512_v60 = vpop.permute.xlu2 %511 }
 0xa88   :  { %v97_v18 = vpop.f32.mrf.mxu0 }
 0xa89   :  { %v98_v19 = vadd.f32 %v1567_v8, %v97_v18  ;;  %v33_v18 = vld [vmem:[%s1900_s0 + $0x20] sm:$0xff] }
 0xa8a   :  { %1306 = vmatmul.msk.f32.gmra.mxu0 %vm42_vm2, %v33_v18 }
 0xad3   :  { %v465_v45 = vpop.permute.xlu0 %464 }
 0xad4   :  { %1323 = vmatmul.msk.f32.vlgmr.msrb.gmra.mxu3 %vm195_vm9, %v465_v45 }
 0xad5   :  { %887 = vmatpush.msrb.mxu3 %v1575_v30 }
 0xad7   :  { %888 = vmatpush.msrb.mxu3 %v1580_v31 }
 0xb57   :  { %v485_v46 = vpop.f32.mrf.mxu3 }
 0xb58   :  { %v486_v36 = vadd.f32 %v1602_v38, %v485_v46 }
 0xb5a   :  { %v491_v48 = vadd.f32 %v489_v47, %v486_v36 }
 0xb5c   :  { %v1324_v49 = vmul.f32 -1.442695, %v491_v48 }
 0xb5e   :  { %1403 = vpow2.f32 %v1324_v49 }
 0xb64   :  { %v1404_v40 = vpop.eup %1403 }
 0xb65   :  { %v495_v50 = vadd.f32 1.0, %v1404_v40 }
 0xb67   :  { %1405 = vrcp.f32 %v495_v50  ;;  %v507_v54 = vand.u32 2147483648, %v495_v50  ;;  %v505_v56 = vand.u32 2147483647, %v495_v50  ;;  %vm501_vm1 = vweird.f32 %v495_v50 }
 0xb69   :  { %v508_v58 = vor.u32 1.1754944e-38, %v507_v54  ;;  %vm506_vm6 = vcmp.eq.f32.partialorder %v505_v56, 8.507059e+37 }
 0xb6d   :  { %v1406_v51 = vpop.eup %1405 }
 0xb6e   :  { %v497_v52 = vmul.f32 %v1406_v51, %v495_v50  ;;  %vm502_vm15 = vweird.f32 %v1406_v51 }
 0xb6f   :  { %vm503_vm5 = vmor %vm501_vm1, %vm502_vm15 }
 0xb70   :  { %v498_v53 = vsub.f32 1.0, %v497_v52 }
 0xb72   :  { %v499_v55 = vmul.f32 %v1406_v51, %v498_v53 }
 0xb74   :  { %v500_v57 = vadd.f32 %v1406_v51, %v499_v55 }
 0xb76   :  { %v504_v59 = vsel %vm503_vm5, %v1406_v51, %v500_v57 }
 0xb77   :  { %v509_v61 = vsel %vm506_vm6, %v508_v58, %v504_v59 }
 0xb78   :  { %v514_v62 = vmul.f32 %v512_v60, %v509_v61  ;;  %v521_v6 = vsub.f32 1.0, %v509_v61  ;;  %v527_v10 = vmul.f32 %v509_v61, %v1640_v7 }
 0xb7a   :  { %516 = vrot.lane.b32.xlu0 %v514_v62, %s1477_s25 }
 0xbec   :  { %v517_v63 = vpop.permute.xlu0 %516 }
 0xbed   :  { %v519_v1 = vadd.f32 %v517_v63, %v486_v36 }
 0xbef   :  { %1407 = vtanh.f32 %v519_v1 }
 0xbf5   :  { %v1408_v5 = vpop.eup %1407 }
 0xbf6   :  { %523 = vrot.lane.b32.xlu1 %v1408_v5, %s1478_s26 }
 0xc68   :  { %v524_v9 = vpop.permute.xlu1 %523 }
 0xc69   :  { %v526_v11 = vmul.f32 %v524_v9, %v521_v6 }
 0xc6b   :  { %v1673_v12 = vadd.f32 %v527_v10, %v526_v11 }
 0xc6d   :  { %531 = vrot.lane.b32.xlu2 %v1673_v12, %s1479_s27 }
 0xcc7   :  { %v532_v14 = vpop.permute.xlu2 %531 }
 0xcc8   :  { %v534_v15 = vsel %vm195_vm9, %v465_v45, %v532_v14 }
 0xcc9   :  { %v535_v16 = vsel %vm120_vm3, %v534_v15, 1.0 }
 0xcca   :  { %1326 = vmatmul.msk.f32.vlgmr.msra.gmra.mxu2 %vm122_vm4, %v535_v16 }
 0xccb   :  { %1340 = vmatpush.msk.msra.mxu2 %vm126_vm0, %v1528_v0 }
 0xccd   :  { %958 = vmatpush.msra.mxu2 %v1536_v2 }
 0xccf   :  { %959 = vmatpush.msra.mxu2 %v1547_v4 }
 0xd4d   :  { %v556_v17 = vpop.f32.mrf.mxu2 }
 0xd4e   :  { %580 = vrot.lane.b32.xlu0 %v556_v17, %s1473_s3  ;;  %v559_v20 = vadd.f32 %v556_v17, %v98_v19 }
 0xd50   :  { %v1327_v21 = vmul.f32 -1.442695, %v559_v20 }
 0xd52   :  { %1409 = vpow2.f32 %v1327_v21 }
 0xd58   :  { %v1410_v22 = vpop.eup %1409 }
 0xd59   :  { %v563_v23 = vadd.f32 1.0, %v1410_v22 }
 0xd5b   :  { %1411 = vrcp.f32 %v563_v23  ;;  %v575_v29 = vand.u32 2147483648, %v563_v23  ;;  %vm569_vm8 = vweird.f32 %v563_v23  ;;  %v573_v32 = vand.u32 2147483647, %v563_v23 }
 0xd5d   :  { %v576_v34 = vor.u32 1.1754944e-38, %v575_v29  ;;  %vm574_vm11 = vcmp.eq.f32.partialorder %v573_v32, 8.507059e+37 }
 0xd61   :  { %v1412_v24 = vpop.eup %1411 }
 0xd62   :  { %v565_v25 = vmul.f32 %v1412_v24, %v563_v23  ;;  %vm570_vm7 = vweird.f32 %v1412_v24  ;;  %v100_v23 = vpop.f32.mrf.mxu0 }
 0xd63   :  { %vm571_vm10 = vmor %vm569_vm8, %vm570_vm7 }
 0xd64   :  { %v566_v26 = vsub.f32 1.0, %v565_v25 }
 0xd66   :  { %v567_v27 = vmul.f32 %v1412_v24, %v566_v26 }
 0xd68   :  { %v568_v28 = vadd.f32 %v1412_v24, %v567_v27 }
 0xd6a   :  { %v572_v33 = vsel %vm571_vm10, %v1412_v24, %v568_v28  ;;  %v101_v24 = vadd.f32 %v1567_v8, %v100_v23 }
 0xd6b   :  { %v577_v37 = vsel %vm574_vm11, %v576_v34, %v572_v33 }
 0xd6c   :  { %v590_v45 = vsub.f32 1.0, %v577_v37  ;;  %v596_v36 = vmul.f32 %v577_v37, %v1662_v44 }
 0xdc0   :  { %v581_v35 = vpop.permute.xlu0 %580 }
 0xdc1   :  { %v583_v39 = vmul.f32 %v581_v35, %v577_v37 }
 0xdc3   :  { %585 = vrot.lane.b32.xlu1 %v583_v39, %s1475_s18 }
 0xdcb   :  { %623 = vrot.lane.b32.xlu1 %v556_v17, %s1472_s1 }
 0xe35   :  { %v586_v41 = vpop.permute.xlu1 %585 }
 0xe36   :  { %v588_v42 = vadd.f32 %v586_v41, %v98_v19 }
 0xe38   :  { %1413 = vtanh.f32 %v588_v42 }
 0xe3d   :  { %v624_v51 = vpop.permute.xlu1 %623 }
 0xe3e   :  { %v1414_v43 = vpop.eup %1413 }
 0xe3f   :  { %592 = vrot.lane.b32.xlu2 %v1414_v43, %s1476_s19 }
 0xe47   :  { %646 = vrot.lane.b32.xlu2 %v556_v17, %s1474_s15 }
 0xe99   :  { %v593_v46 = vpop.permute.xlu2 %592 }
 0xe9a   :  { %v595_v47 = vmul.f32 %v593_v46, %v590_v45 }
 0xe9c   :  { %v1695_v48 = vadd.f32 %v596_v36, %v595_v47 }
 0xe9e   :  { %599 = vrot.lane.b32.xlu0 %v1695_v48, %s1476_s19 }
 0xea1   :  { %v647_v1 = vpop.permute.xlu2 %646 }
 0xf10   :  { %v600_v49 = vpop.permute.xlu0 %599 }
 0xf11   :  { %1328 = vmatmul.msk.f32.vlgmr.msra.gmra.mxu1 %vm195_vm9, %v600_v49 }
 0xf12   :  { %1022 = vmatpush.msra.mxu1 %v1575_v30 }
 0xf14   :  { %1023 = vmatpush.msra.mxu1 %v1580_v31 }
 0xf8e   :  { %v620_v40 = vpop.f32.mrf.mxu1 }
 0xf8f   :  { %v621_v50 = vadd.f32 %v1602_v38, %v620_v40 }
 0xf91   :  { %v626_v52 = vadd.f32 %v624_v51, %v621_v50 }
 0xf93   :  { %v1329_v53 = vmul.f32 -1.442695, %v626_v52 }
 0xf95   :  { %1415 = vpow2.f32 %v1329_v53 }
 0xf9b   :  { %v1416_v44 = vpop.eup %1415 }
 0xf9c   :  { %v630_v54 = vadd.f32 1.0, %v1416_v44 }
 0xf9e   :  { %1417 = vrcp.f32 %v630_v54  ;;  %v642_v58 = vand.u32 2147483648, %v630_v54  ;;  %v640_v60 = vand.u32 2147483647, %v630_v54  ;;  %vm636_vm13 = vweird.f32 %v630_v54 }
 0xfa0   :  { %v643_v62 = vor.u32 1.1754944e-38, %v642_v58  ;;  %vm641_vm15 = vcmp.eq.f32.partialorder %v640_v60, 8.507059e+37 }
 0xfa4   :  { %v1418_v55 = vpop.eup %1417 }
 0xfa5   :  { %v632_v56 = vmul.f32 %v1418_v55, %v630_v54  ;;  %vm637_vm12 = vweird.f32 %v1418_v55 }
 0xfa6   :  { %vm638_vm14 = vmor %vm636_vm13, %vm637_vm12 }
 0xfa7   :  { %v633_v57 = vsub.f32 1.0, %v632_v56 }
 0xfa9   :  { %v634_v59 = vmul.f32 %v1418_v55, %v633_v57 }
 0xfab   :  { %v635_v61 = vadd.f32 %v1418_v55, %v634_v59 }
 0xfad   :  { %v639_v63 = vsel %vm638_vm14, %v1418_v55, %v635_v61 }
 0xfae   :  { %v644_v5 = vsel %vm641_vm15, %v643_v62, %v639_v63 }
 0xfaf   :  { %v649_v6 = vmul.f32 %v647_v1, %v644_v5  ;;  %v656_v13 = vsub.f32 1.0, %v644_v5  ;;  %v662_v15 = vmul.f32 %v644_v5, %v1673_v12 }
 0xfb1   :  { %651 = vrot.lane.b32.xlu0 %v649_v6, %s1477_s25 }
0x1023   :  { %v652_v9 = vpop.permute.xlu0 %651 }
0x1024   :  { %v654_v10 = vadd.f32 %v652_v9, %v621_v50 }
0x1026   :  { %1419 = vtanh.f32 %v654_v10 }
0x102c   :  { %v1420_v11 = vpop.eup %1419 }
0x102d   :  { %658 = vrot.lane.b32.xlu1 %v1420_v11, %s1478_s26 }
0x109f   :  { %v659_v14 = vpop.permute.xlu1 %658 }
0x10a0   :  { %v661_v16 = vmul.f32 %v659_v14, %v656_v13 }
0x10a2   :  { %v1706_v17 = vadd.f32 %v662_v15, %v661_v16 }
0x10a4   :  { %666 = vrot.lane.b32.xlu2 %v1706_v17, %s1479_s27 }
0x10fe   :  { %v667_v19 = vpop.permute.xlu2 %666 }
0x10ff   :  { %v669_v20 = vsel %vm195_vm9, %v600_v49, %v667_v19  ;;  %v34_v19 = vld [vmem:[%s1900_s0 + $0x28] sm:$0xff] }
0x1100   :  { %v670_v21 = vsel %vm120_vm3, %v669_v20, 1.0  ;;  %1307 = vmatmul.msk.f32.gmra.mxu0 %vm42_vm2, %v34_v19  ;;  %v35_v19 = vld [vmem:[%s1900_s0 + $0x30] sm:$0xff] }
0x1101   :  { %1331 = vmatmul.msk.f32.vlgmr.msra.gmra.mxu3 %vm122_vm4, %v670_v21 }
0x1102   :  { %1345 = vmatpush.msk.msra.mxu3 %vm126_vm0, %v1528_v0 }
0x1104   :  { %1093 = vmatpush.msra.mxu3 %v1536_v2 }
0x1106   :  { %1094 = vmatpush.msra.mxu3 %v1547_v4 }
0x1108   :  { %1308 = vmatmul.msk.f32.gmra.mxu0 %vm42_vm2, %v35_v19 }
0x1184   :  { %v691_v22 = vpop.f32.mrf.mxu3 }
0x1185   :  { %715 = vrot.lane.b32.xlu0 %v691_v22, %s1473_s3  ;;  %v694_v25 = vadd.f32 %v691_v22, %v101_v24 }
0x1187   :  { %v1332_v26 = vmul.f32 -1.442695, %v694_v25 }
0x1189   :  { %1421 = vpow2.f32 %v1332_v26 }
0x118f   :  { %v1422_v27 = vpop.eup %1421 }
0x1190   :  { %v698_v28 = vadd.f32 1.0, %v1422_v27 }
0x1192   :  { %1423 = vrcp.f32 %v698_v28  ;;  %v710_v2 = vand.u32 2147483648, %v698_v28  ;;  %vm704_vm1 = vweird.f32 %v698_v28  ;;  %v708_v4 = vand.u32 2147483647, %v698_v28 }
0x1194   :  { %v711_v37 = vor.u32 1.1754944e-38, %v710_v2  ;;  %vm709_vm6 = vcmp.eq.f32.partialorder %v708_v4, 8.507059e+37 }
0x1198   :  { %v1424_v29 = vpop.eup %1423 }
0x1199   :  { %v700_v32 = vmul.f32 %v1424_v29, %v698_v28  ;;  %vm705_vm0 = vweird.f32 %v1424_v29 }
0x119a   :  { %vm706_vm5 = vmor %vm704_vm1, %vm705_vm0 }
0x119b   :  { %v701_v33 = vsub.f32 1.0, %v700_v32 }
0x119d   :  { %v702_v0 = vmul.f32 %v1424_v29, %v701_v33 }
0x119f   :  { %v703_v34 = vadd.f32 %v1424_v29, %v702_v0 }
0x11a1   :  { %v707_v35 = vsel %vm706_vm5, %v1424_v29, %v703_v34 }
0x11a2   :  { %v712_v41 = vsel %vm709_vm6, %v711_v37, %v707_v35 }
0x11a3   :  { %v725_v36 = vsub.f32 1.0, %v712_v41  ;;  %v731_v49 = vmul.f32 %v712_v41, %v1695_v48 }
0x11f7   :  { %v716_v39 = vpop.permute.xlu0 %715 }
0x11f8   :  { %v718_v42 = vmul.f32 %v716_v39, %v712_v41 }
0x11fa   :  { %720 = vrot.lane.b32.xlu1 %v718_v42, %s1475_s18 }
0x1202   :  { %758 = vrot.lane.b32.xlu1 %v691_v22, %s1472_s1 }
0x126c   :  { %v721_v43 = vpop.permute.xlu1 %720 }
0x126d   :  { %v723_v45 = vadd.f32 %v721_v43, %v101_v24  ;;  %v103_v24 = vpop.f32.mrf.mxu0 }
0x126e   :  { %v104_v25 = vadd.f32 %v1567_v8, %v103_v24 }
0x126f   :  { %1425 = vtanh.f32 %v723_v45 }
0x1274   :  { %v759_v44 = vpop.permute.xlu1 %758 }
0x1275   :  { %v1426_v46 = vpop.eup %1425  ;;  %v106_v24 = vpop.f32.mrf.mxu0 }
0x1276   :  { %727 = vrot.lane.b32.xlu2 %v1426_v46, %s1476_s19 }
0x127e   :  { %781 = vrot.lane.b32.xlu2 %v691_v22, %s1474_s15 }
0x12d0   :  { %v728_v47 = vpop.permute.xlu2 %727 }
0x12d1   :  { %v730_v40 = vmul.f32 %v728_v47, %v725_v36 }
0x12d3   :  { %v1728_v50 = vadd.f32 %v731_v49, %v730_v40 }
0x12d5   :  { %734 = vrot.lane.b32.xlu0 %v1728_v50, %s1476_s19 }
0x12d8   :  { %v782_v1 = vpop.permute.xlu2 %781 }
0x1347   :  { %v735_v51 = vpop.permute.xlu0 %734 }
0x1348   :  { %1333 = vmatmul.msk.f32.vlgmr.msrb.gmra.mxu2 %vm195_vm9, %v735_v51 }
0x1349   :  { %1157 = vmatpush.msrb.mxu2 %v1575_v30 }
0x134b   :  { %1158 = vmatpush.msrb.mxu2 %v1580_v31 }
0x13cb   :  { %v755_v52 = vpop.f32.mrf.mxu2 }
0x13cc   :  { %v756_v53 = vadd.f32 %v1602_v38, %v755_v52 }
0x13ce   :  { %v761_v54 = vadd.f32 %v759_v44, %v756_v53 }
0x13d0   :  { %v1334_v55 = vmul.f32 -1.442695, %v761_v54 }
0x13d2   :  { %1427 = vpow2.f32 %v1334_v55 }
0x13d8   :  { %v1428_v48 = vpop.eup %1427 }
0x13d9   :  { %v765_v56 = vadd.f32 1.0, %v1428_v48 }
0x13db   :  { %1429 = vrcp.f32 %v765_v56  ;;  %v777_v60 = vand.u32 2147483648, %v765_v56  ;;  %v775_v62 = vand.u32 2147483647, %v765_v56  ;;  %vm771_vm8 = vweird.f32 %v765_v56 }
0x13dd   :  { %v778_v31 = vor.u32 1.1754944e-38, %v777_v60  ;;  %vm776_vm11 = vcmp.eq.f32.partialorder %v775_v62, 8.507059e+37 }
0x13e1   :  { %v1430_v57 = vpop.eup %1429 }
0x13e2   :  { %v767_v58 = vmul.f32 %v1430_v57, %v765_v56  ;;  %vm772_vm7 = vweird.f32 %v1430_v57 }
0x13e3   :  { %vm773_vm10 = vmor %vm771_vm8, %vm772_vm7 }
0x13e4   :  { %v768_v59 = vsub.f32 1.0, %v767_v58 }
0x13e6   :  { %v769_v61 = vmul.f32 %v1430_v57, %v768_v59 }
0x13e8   :  { %v770_v30 = vadd.f32 %v1430_v57, %v769_v61 }
0x13ea   :  { %v774_v63 = vsel %vm773_vm10, %v1430_v57, %v770_v30 }
0x13eb   :  { %v779_v5 = vsel %vm776_vm11, %v778_v31, %v774_v63 }
0x13ec   :  { %v784_v6 = vmul.f32 %v782_v1, %v779_v5  ;;  %v791_v13 = vsub.f32 1.0, %v779_v5  ;;  %v797_v15 = vmul.f32 %v779_v5, %v1706_v17 }
0x13ee   :  { %786 = vrot.lane.b32.xlu0 %v784_v6, %s1477_s25 }
0x1460   :  { %v787_v9 = vpop.permute.xlu0 %786 }
0x1461   :  { %v789_v10 = vadd.f32 %v787_v9, %v756_v53 }
0x1463   :  { %1431 = vtanh.f32 %v789_v10 }
0x1469   :  { %v1432_v11 = vpop.eup %1431 }
0x146a   :  { %793 = vrot.lane.b32.xlu1 %v1432_v11, %s1478_s26 }
0x14dc   :  { %v794_v14 = vpop.permute.xlu1 %793 }
0x14dd   :  { %v796_v16 = vmul.f32 %v794_v14, %v791_v13 }
0x14df   :  { %v1739_v18 = vadd.f32 %v797_v15, %v796_v16 }
0x14e1   :  { %801 = vrot.lane.b32.xlu2 %v1739_v18, %s1479_s27 }
0x153b   :  { %v802_v20 = vpop.permute.xlu2 %801 }
0x153c   :  { %v804_v21 = vsel %vm195_vm9, %v735_v51, %v802_v20 }
0x153d   :  { %v805_v22 = vsel %vm120_vm3, %v804_v21, 1.0 }
0x153e   :  { %1336 = vmatmul.msk.f32.vlgmr.msrb.gmra.mxu1 %vm122_vm4, %v805_v22 }
0x15bb   :  { %v826_v23 = vpop.f32.mrf.mxu1 }
0x15bc   :  { %850 = vrot.lane.b32.xlu0 %v826_v23, %s1473_s3  ;;  %v829_v26 = vadd.f32 %v826_v23, %v104_v25 }
0x15be   :  { %v1337_v27 = vmul.f32 -1.442695, %v829_v26 }
0x15c0   :  { %1433 = vpow2.f32 %v1337_v27 }
0x15c6   :  { %v1434_v28 = vpop.eup %1433 }
0x15c7   :  { %v833_v29 = vadd.f32 1.0, %v1434_v28 }
0x15c9   :  { %1435 = vrcp.f32 %v833_v29  ;;  %v845_v4 = vand.u32 2147483648, %v833_v29  ;;  %vm839_vm13 = vweird.f32 %v833_v29  ;;  %v843_v35 = vand.u32 2147483647, %v833_v29 }
0x15cb   :  { %v846_v39 = vor.u32 1.1754944e-38, %v845_v4  ;;  %vm844_vm15 = vcmp.eq.f32.partialorder %v843_v35, 8.507059e+37 }
0x15cf   :  { %v1436_v32 = vpop.eup %1435 }
0x15d0   :  { %v835_v33 = vmul.f32 %v1436_v32, %v833_v29  ;;  %vm840_vm12 = vweird.f32 %v1436_v32 }
0x15d1   :  { %vm841_vm14 = vmor %vm839_vm13, %vm840_vm12 }
0x15d2   :  { %v836_v0 = vsub.f32 1.0, %v835_v33 }
0x15d4   :  { %v837_v34 = vmul.f32 %v1436_v32, %v836_v0 }
0x15d6   :  { %v838_v2 = vadd.f32 %v1436_v32, %v837_v34 }
0x15d8   :  { %v842_v37 = vsel %vm841_vm14, %v1436_v32, %v838_v2 }
0x15d9   :  { %v847_v41 = vsel %vm844_vm15, %v846_v39, %v842_v37 }
0x15da   :  { %v860_v36 = vsub.f32 1.0, %v847_v41  ;;  %v866_v49 = vmul.f32 %v847_v41, %v1728_v50 }
0x162e   :  { %v851_v8 = vpop.permute.xlu0 %850 }
0x162f   :  { %v853_v42 = vmul.f32 %v851_v8, %v847_v41 }
0x1631   :  { %855 = vrot.lane.b32.xlu1 %v853_v42, %s1475_s18 }
0x1639   :  { %893 = vrot.lane.b32.xlu1 %v826_v23, %s1472_s1 }
0x16a3   :  { %v856_v43 = vpop.permute.xlu1 %855 }
0x16a4   :  { %v858_v45 = vadd.f32 %v856_v43, %v104_v25  ;;  %v1781_v25 = vld [vmem:[%s1901_s2] ss:$0 sm:$0xff] }
0x16a5   :  { %v107_v26 = vadd.f32 %v1781_v25, %v106_v24 }
0x16a6   :  { %1437 = vtanh.f32 %v858_v45 }
0x16ab   :  { %v894_v54 = vpop.permute.xlu1 %893 }
0x16ac   :  { %v1438_v46 = vpop.eup %1437 }
0x16ad   :  { %862 = vrot.lane.b32.xlu2 %v1438_v46, %s1476_s19 }
0x16b5   :  { %916 = vrot.lane.b32.xlu2 %v826_v23, %s1474_s15 }
0x1707   :  { %v863_v47 = vpop.permute.xlu2 %862 }
0x1708   :  { %v865_v40 = vmul.f32 %v863_v47, %v860_v36 }
0x170a   :  { %v1757_v51 = vadd.f32 %v866_v49, %v865_v40 }
0x170c   :  { %869 = vrot.lane.b32.xlu0 %v1757_v51, %s1476_s19 }
0x177e   :  { %v870_v52 = vpop.permute.xlu0 %869 }
0x177f   :  { %1338 = vmatmul.msk.f32.vlgmr.msrb.gmra.mxu3 %vm195_vm9, %v870_v52 }
0x1802   :  { %v890_v53 = vpop.f32.mrf.mxu3 }
0x1803   :  { %v891_v44 = vadd.f32 %v1602_v38, %v890_v53  ;;  %v917_v38 = vpop.permute.xlu2 %916 }
0x1805   :  { %v896_v55 = vadd.f32 %v894_v54, %v891_v44 }
0x1807   :  { %v1339_v48 = vmul.f32 -1.442695, %v896_v55  ;;  %v1797_v55 = vld [vmem:[%s1903_s5] ss:$0 sm:$0xff] }
0x1809   :  { %1439 = vpow2.f32 %v1339_v48 }
0x180f   :  { %v1440_v56 = vpop.eup %1439 }
0x1810   :  { %v900_v57 = vadd.f32 1.0, %v1440_v56 }
0x1812   :  { %1441 = vrcp.f32 %v900_v57  ;;  %v912_v60 = vand.u32 2147483648, %v900_v57  ;;  %v910_v62 = vand.u32 2147483647, %v900_v57  ;;  %vm906_vm1 = vweird.f32 %v900_v57 }
0x1814   :  { %v913_v31 = vor.u32 1.1754944e-38, %v912_v60  ;;  %vm911_vm6 = vcmp.eq.f32.partialorder %v910_v62, 8.507059e+37 }
0x1818   :  { %v1442_v50 = vpop.eup %1441 }
0x1819   :  { %v902_v58 = vmul.f32 %v1442_v50, %v900_v57  ;;  %vm907_vm0 = vweird.f32 %v1442_v50 }
0x181a   :  { %vm908_vm5 = vmor %vm906_vm1, %vm907_vm0  ;;  %vm1243_vm1 = vcmask 1043456  }
0x181b   :  { %v903_v59 = vsub.f32 1.0, %v902_v58 }
0x181d   :  { %v904_v61 = vmul.f32 %v1442_v50, %v903_v59 }
0x181f   :  { %v905_v30 = vadd.f32 %v1442_v50, %v904_v61 }
0x1821   :  { %v909_v63 = vsel %vm908_vm5, %v1442_v50, %v905_v30  ;;  %vm1226_vm5 = vcmask 31744  }
0x1822   :  { %v914_v1 = vsel %vm911_vm6, %v913_v31, %v909_v63  ;;  %vm1288_vm6 = vcmask 15360  }
0x1823   :  { %v919_v5 = vmul.f32 %v917_v38, %v914_v1  ;;  %v926_v11 = vsub.f32 1.0, %v914_v1  ;;  %v932_v14 = vmul.f32 %v914_v1, %v1739_v18 }
0x1825   :  { %921 = vrot.lane.b32.xlu0 %v919_v5, %s1477_s25 }
0x1897   :  { %v922_v6 = vpop.permute.xlu0 %921 }
0x1898   :  { %v924_v9 = vadd.f32 %v922_v6, %v891_v44 }
0x189a   :  { %1443 = vtanh.f32 %v924_v9 }
0x18a0   :  { %v1444_v10 = vpop.eup %1443 }
0x18a1   :  { %928 = vrot.lane.b32.xlu1 %v1444_v10, %s1478_s26 }
0x1913   :  { %v929_v13 = vpop.permute.xlu1 %928 }
0x1914   :  { %v931_v15 = vmul.f32 %v929_v13, %v926_v11 }
0x1916   :  { %v1766_v16 = vadd.f32 %v932_v14, %v931_v15 }
0x1918   :  { %936 = vrot.lane.b32.xlu2 %v1766_v16, %s1479_s27 }
0x1972   :  { %v937_v20 = vpop.permute.xlu2 %936 }
0x1973   :  { %v939_v21 = vsel %vm195_vm9, %v870_v52, %v937_v20 }
0x1974   :  { %v940_v22 = vsel %vm120_vm3, %v939_v21, 1.0 }
0x1975   :  { %1341 = vmatmul.msk.f32.vlgmr.msra.gmra.mxu2 %vm122_vm4, %v940_v22  ;;  %v36_v22 = vld [vmem:[%s1900_s0 + $0x38] sm:$0xff] }
0x1976   :  { %1309 = vmatmul.msk.f32.gmra.mxu0 %vm42_vm2, %v36_v22 }
0x19f8   :  { %v961_v23 = vpop.f32.mrf.mxu2 }
0x19f9   :  { %985 = vrot.lane.b32.xlu0 %v961_v23, %s1473_s3  ;;  %v964_v27 = vadd.f32 %v961_v23, %v107_v26 }
0x19fb   :  { %v1342_v28 = vmul.f32 -1.442695, %v964_v27 }
0x19fd   :  { %1445 = vpow2.f32 %v1342_v28  ;;  %v109_v28 = vpop.f32.mrf.mxu0 }
0x1a03   :  { %v1446_v29 = vpop.eup %1445 }
0x1a04   :  { %v968_v32 = vadd.f32 1.0, %v1446_v29  ;;  %v110_v29 = vadd.f32 %v1781_v25, %v109_v28 }
0x1a06   :  { %1447 = vrcp.f32 %v968_v32  ;;  %v980_v35 = vand.u32 2147483648, %v968_v32  ;;  %vm974_vm8 = vweird.f32 %v968_v32  ;;  %v978_v37 = vand.u32 2147483647, %v968_v32 }
0x1a08   :  { %v981_v8 = vor.u32 1.1754944e-38, %v980_v35  ;;  %vm979_vm11 = vcmp.eq.f32.partialorder %v978_v37, 8.507059e+37 }
0x1a0c   :  { %v1448_v33 = vpop.eup %1447 }
0x1a0d   :  { %v970_v0 = vmul.f32 %v1448_v33, %v968_v32  ;;  %vm975_vm7 = vweird.f32 %v1448_v33 }
0x1a0e   :  { %vm976_vm10 = vmor %vm974_vm8, %vm975_vm7 }
0x1a0f   :  { %v971_v34 = vsub.f32 1.0, %v970_v0 }
0x1a11   :  { %v972_v2 = vmul.f32 %v1448_v33, %v971_v34 }
0x1a13   :  { %v973_v4 = vadd.f32 %v1448_v33, %v972_v2 }
0x1a15   :  { %v977_v39 = vsel %vm976_vm10, %v1448_v33, %v973_v4 }
0x1a16   :  { %v982_v42 = vsel %vm979_vm11, %v981_v8, %v977_v39 }
0x1a17   :  { %v995_v47 = vsub.f32 1.0, %v982_v42  ;;  %v1001_v40 = vmul.f32 %v982_v42, %v1757_v51 }
0x1a6b   :  { %v986_v41 = vpop.permute.xlu0 %985 }
0x1a6c   :  { %v988_v43 = vmul.f32 %v986_v41, %v982_v42 }
0x1a6e   :  { %990 = vrot.lane.b32.xlu1 %v988_v43, %s1475_s18 }
0x1a76   :  { %1028 = vrot.lane.b32.xlu1 %v961_v23, %s1472_s1 }
0x1ae0   :  { %v991_v45 = vpop.permute.xlu1 %990 }
0x1ae1   :  { %v993_v46 = vadd.f32 %v991_v45, %v107_v26 }
0x1ae3   :  { %1449 = vtanh.f32 %v993_v46 }
0x1ae8   :  { %v1029_v56 = vpop.permute.xlu1 %1028 }
0x1ae9   :  { %v1450_v36 = vpop.eup %1449 }
0x1aea   :  { %997 = vrot.lane.b32.xlu2 %v1450_v36, %s1476_s19 }
0x1af2   :  { %1051 = vrot.lane.b32.xlu2 %v961_v23, %s1474_s15 }
0x1b44   :  { %v998_v49 = vpop.permute.xlu2 %997 }
0x1b45   :  { %v1000_v52 = vmul.f32 %v998_v49, %v995_v47 }
0x1b47   :  { %v1789_v53 = vadd.f32 %v1001_v40, %v1000_v52  ;;  %v1204_v40 = vld [vmem:[%s1904_s6] sm:$0xf] }
0x1b48   :  { %1360 = vmatpush.msk.msrb.mxu3 %vm1243_vm1, %v1204_v40  ;;  %1350 = vmatpush.msk.msrb.mxu1 %vm1243_vm1, %v1204_v40 }
0x1b49   :  { %1004 = vrot.lane.b32.xlu0 %v1789_v53, %s1476_s19  ;;  %1359 = vmatpush.msk.msra.mxu2 %vm1243_vm1, %v1204_v40 }
0x1b4c   :  { %v1052_v5 = vpop.permute.xlu2 %1051 }
0x1bbb   :  { %v1005_v44 = vpop.permute.xlu0 %1004 }
0x1bbc   :  { %1343 = vmatmul.msk.f32.vlgmr.msra.gmra.mxu1 %vm195_vm9, %v1005_v44 }
0x1c39   :  { %v1025_v54 = vpop.f32.mrf.mxu1 }
0x1c3a   :  { %v1026_v48 = vadd.f32 %v1797_v55, %v1025_v54 }
0x1c3c   :  { %v1031_v57 = vadd.f32 %v1029_v56, %v1026_v48 }
0x1c3e   :  { %v1344_v51 = vmul.f32 -1.442695, %v1031_v57 }
0x1c40   :  { %1451 = vpow2.f32 %v1344_v51 }
0x1c46   :  { %v1452_v50 = vpop.eup %1451 }
0x1c47   :  { %v1035_v58 = vadd.f32 1.0, %v1452_v50 }
0x1c49   :  { %1453 = vrcp.f32 %v1035_v58  ;;  %v1047_v62 = vand.u32 2147483648, %v1035_v58  ;;  %v1045_v31 = vand.u32 2147483647, %v1035_v58  ;;  %vm1041_vm13 = vweird.f32 %v1035_v58 }
0x1c4b   :  { %v1048_v38 = vor.u32 1.1754944e-38, %v1047_v62  ;;  %vm1046_vm15 = vcmp.eq.f32.partialorder %v1045_v31, 8.507059e+37 }
0x1c4f   :  { %v1454_v59 = vpop.eup %1453 }
0x1c50   :  { %v1037_v60 = vmul.f32 %v1454_v59, %v1035_v58  ;;  %vm1042_vm12 = vweird.f32 %v1454_v59  ;;  %v1835_v58 = vld [vmem:[%s1905_s7] ss:$0 sm:$0xff] }
0x1c51   :  { %vm1043_vm14 = vmor %vm1041_vm13, %vm1042_vm12 }
0x1c52   :  { %v1038_v61 = vsub.f32 1.0, %v1037_v60 }
0x1c54   :  { %v1039_v30 = vmul.f32 %v1454_v59, %v1038_v61 }
0x1c56   :  { %v1040_v63 = vadd.f32 %v1454_v59, %v1039_v30 }
0x1c58   :  { %v1044_v1 = vsel %vm1043_vm14, %v1454_v59, %v1040_v63 }
0x1c59   :  { %v1049_v6 = vsel %vm1046_vm15, %v1048_v38, %v1044_v1 }
0x1c5a   :  { %v1054_v9 = vmul.f32 %v1052_v5, %v1049_v6  ;;  %v1061_v14 = vsub.f32 1.0, %v1049_v6  ;;  %v1067_v19 = vmul.f32 %v1049_v6, %v1766_v16 }
0x1c5c   :  { %1056 = vrot.lane.b32.xlu0 %v1054_v9, %s1477_s25 }
0x1cce   :  { %v1057_v10 = vpop.permute.xlu0 %1056 }
0x1ccf   :  { %v1059_v11 = vadd.f32 %v1057_v10, %v1026_v48 }
0x1cd1   :  { %1455 = vtanh.f32 %v1059_v11 }
0x1cd7   :  { %v1456_v13 = vpop.eup %1455 }
0x1cd8   :  { %1063 = vrot.lane.b32.xlu1 %v1456_v13, %s1478_s26 }
0x1d4a   :  { %v1064_v15 = vpop.permute.xlu1 %1063 }
0x1d4b   :  { %v1066_v20 = vmul.f32 %v1064_v15, %v1061_v14 }
0x1d4d   :  { %v1803_v21 = vadd.f32 %v1067_v19, %v1066_v20 }
0x1d4f   :  { %1071 = vrot.lane.b32.xlu2 %v1803_v21, %s1479_s27 }
0x1da9   :  { %v1072_v23 = vpop.permute.xlu2 %1071 }
0x1daa   :  { %v1074_v24 = vsel %vm195_vm9, %v1005_v44, %v1072_v23 }
0x1dab   :  { %v1075_v26 = vsel %vm120_vm3, %v1074_v24, 1.0 }
0x1dac   :  { %1346 = vmatmul.msk.f32.vlgmr.msra.gmra.mxu3 %vm122_vm4, %v1075_v26 }
0x1e2f   :  { %v1096_v27 = vpop.f32.mrf.mxu3 }
0x1e30   :  { %1120 = vrot.lane.b32.xlu0 %v1096_v27, %s1473_s3  ;;  %v1099_v32 = vadd.f32 %v1096_v27, %v110_v29 }
0x1e32   :  { %v1347_v33 = vmul.f32 -1.442695, %v1099_v32 }
0x1e34   :  { %1457 = vpow2.f32 %v1347_v33 }
0x1e3a   :  { %v1458_v0 = vpop.eup %1457 }
0x1e3b   :  { %v1103_v34 = vadd.f32 1.0, %v1458_v0 }
0x1e3d   :  { %1459 = vrcp.f32 %v1103_v34  ;;  %v1115_v8 = vand.u32 2147483648, %v1103_v34  ;;  %vm1109_vm3 = vweird.f32 %v1103_v34  ;;  %v1113_v41 = vand.u32 2147483647, %v1103_v34 }
0x1e3f   :  { %v1116_v43 = vor.u32 1.1754944e-38, %v1115_v8  ;;  %vm1114_vm0 = vcmp.eq.f32.partialorder %v1113_v41, 8.507059e+37 }
0x1e43   :  { %v1460_v2 = vpop.eup %1459 }
0x1e44   :  { %v1105_v4 = vmul.f32 %v1460_v2, %v1103_v34  ;;  %vm1110_vm2 = vweird.f32 %v1460_v2 }
0x1e45   :  { %vm1111_vm4 = vmor %vm1109_vm3, %vm1110_vm2 }
0x1e46   :  { %v1106_v35 = vsub.f32 1.0, %v1105_v4 }
0x1e48   :  { %v1107_v37 = vmul.f32 %v1460_v2, %v1106_v35 }
0x1e4a   :  { %v1108_v39 = vadd.f32 %v1460_v2, %v1107_v37 }
0x1e4c   :  { %v1112_v42 = vsel %vm1111_vm4, %v1460_v2, %v1108_v39 }
0x1e4d   :  { %v1117_v45 = vsel %vm1114_vm0, %v1116_v43, %v1112_v42 }
0x1e4e   :  { %v1130_v52 = vsub.f32 1.0, %v1117_v45  ;;  %v1136_v54 = vmul.f32 %v1117_v45, %v1789_v53 }
0x1ea2   :  { %v1121_v25 = vpop.permute.xlu0 %1120 }
0x1ea3   :  { %v1123_v46 = vmul.f32 %v1121_v25, %v1117_v45 }
0x1ea5   :  { %1125 = vrot.lane.b32.xlu1 %v1123_v46, %s1475_s18 }
0x1ead   :  { %1163 = vrot.lane.b32.xlu1 %v1096_v27, %s1472_s1 }
0x1f17   :  { %v1126_v36 = vpop.permute.xlu1 %1125 }
0x1f18   :  { %v1128_v47 = vadd.f32 %v1126_v36, %v110_v29 }
0x1f1a   :  { %1461 = vtanh.f32 %v1128_v47 }
0x1f1f   :  { %v1164_v31 = vpop.permute.xlu1 %1163 }
0x1f20   :  { %v1462_v49 = vpop.eup %1461 }
0x1f21   :  { %1132 = vrot.lane.b32.xlu2 %v1462_v49, %s1476_s19 }
0x1f29   :  { %1186 = vrot.lane.b32.xlu2 %v1096_v27, %s1474_s15 }
0x1f31   :  { %1220 = vrot.lane.b32.xlu2 %v1766_v16, %s1478_s26 }
0x1f39   :  { %1222 = vrot.lane.b32.xlu2 %v1803_v21, %s1478_s26 }
0x1f7b   :  { %v1133_v44 = vpop.permute.xlu2 %1132 }
0x1f7c   :  { %v1135_v48 = vmul.f32 %v1133_v44, %v1130_v52 }
0x1f7e   :  { %v1137_v56 = vadd.f32 %v1136_v54, %v1135_v48 }
0x1f80   :  { %1139 = vrot.lane.b32.xlu0 %v1137_v56, %s1476_s19 }
0x1f83   :  { %v1187_v16 = vpop.permute.xlu2 %1186 }
0x1f8b   :  { %v1221_v57 = vpop.permute.xlu2 %1220 }
0x1f8c   :  { %1356 = vmatmul.msk.f32.vlgmr.msrb.gmra.mxu3 %vm1226_vm5, %v1221_v57 }
0x1f93   :  { %v1223_v51 = vpop.permute.xlu2 %1222 }
0x1f94   :  { %1357 = vmatmul.msk.f32.gmra.mxu3 %vm1226_vm5, %v1223_v51 }
0x1ff2   :  { %v1140_v50 = vpop.permute.xlu0 %1139 }
0x1ff3   :  { %1348 = vmatmul.msk.f32.vlgmr.msrb.gmra.mxu2 %vm195_vm9, %v1140_v50 }
0x200f   :  { %v1279_v53 = vpop.f32.mrf.mxu3 }
0x2010   :  { %v1280_v59 = vadd.f32 %v1835_v58, %v1279_v53 }
0x2012   :  { %1294 = vst.msk [vmem:[%s1906_s8 + $0x28] sm:$0xff] %vm1288_vm6, %v1280_v59 }
0x2017   :  { %v1282_v60 = vpop.f32.mrf.mxu3 }
0x2018   :  { %v1283_v61 = vadd.f32 %v1835_v58, %v1282_v60 }
0x201a   :  { %1295 = vst.msk [vmem:[%s1906_s8 + $0x30] sm:$0xff] %vm1288_vm6, %v1283_v61 }
0x2076   :  { %v1160_v62 = vpop.f32.mrf.mxu2 }
0x2077   :  { %v1161_v30 = vadd.f32 %v1797_v55, %v1160_v62 }
0x2079   :  { %v1166_v63 = vadd.f32 %v1164_v31, %v1161_v30 }
0x207b   :  { %v1349_v38 = vmul.f32 -1.442695, %v1166_v63 }
0x207d   :  { %1463 = vpow2.f32 %v1349_v38 }
0x2083   :  { %v1464_v1 = vpop.eup %1463 }
0x2084   :  { %v1170_v5 = vadd.f32 1.0, %v1464_v1 }
0x2086   :  { %1465 = vrcp.f32 %v1170_v5  ;;  %v1182_v11 = vand.u32 2147483648, %v1170_v5  ;;  %v1180_v14 = vand.u32 2147483647, %v1170_v5  ;;  %vm1176_vm7 = vweird.f32 %v1170_v5 }
0x2088   :  { %v1183_v19 = vor.u32 1.1754944e-38, %v1182_v11  ;;  %vm1181_vm10 = vcmp.eq.f32.partialorder %v1180_v14, 8.507059e+37 }
0x208c   :  { %v1466_v6 = vpop.eup %1465 }
0x208d   :  { %v1172_v9 = vmul.f32 %v1466_v6, %v1170_v5  ;;  %vm1177_vm9 = vweird.f32 %v1466_v6 }
0x208e   :  { %vm1178_vm8 = vmor %vm1176_vm7, %vm1177_vm9 }
0x208f   :  { %v1173_v10 = vsub.f32 1.0, %v1172_v9 }
0x2091   :  { %v1174_v13 = vmul.f32 %v1466_v6, %v1173_v10 }
0x2093   :  { %v1175_v15 = vadd.f32 %v1466_v6, %v1174_v13 }
0x2095   :  { %v1179_v20 = vsel %vm1178_vm8, %v1466_v6, %v1175_v15 }
0x2096   :  { %v1184_v55 = vsel %vm1181_vm10, %v1183_v19, %v1179_v20 }
0x2097   :  { %v1189_v22 = vmul.f32 %v1187_v16, %v1184_v55  ;;  %v1202_v29 = vmul.f32 %v1184_v55, %v1803_v21 }
0x2099   :  { %1191 = vrot.lane.b32.xlu0 %v1189_v22, %s1477_s25 }
0x20a1   :  { %1210 = vrot.lane.b32.xlu0 %v1607_v3, %s1478_s26 }
0x20a9   :  { %1212 = vrot.lane.b32.xlu0 %v1640_v7, %s1478_s26  ;;  %v1196_v7 = vsub.f32 1.0, %v1184_v55 }
0x20b1   :  { %1214 = vrot.lane.b32.xlu0 %v1673_v12, %s1478_s26 }
0x210b   :  { %v1192_v23 = vpop.permute.xlu0 %1191 }
0x210c   :  { %v1194_v24 = vadd.f32 %v1192_v23, %v1161_v30 }
0x210e   :  { %1467 = vtanh.f32 %v1194_v24 }
0x2113   :  { %v1211_v26 = vpop.permute.xlu0 %1210 }
0x2114   :  { %v1468_v27 = vpop.eup %1467  ;;  %1351 = vmatmul.msk.f32.vlgmr.msrb.gmra.mxu1 %vm1226_vm5, %v1211_v26 }
0x2115   :  { %1198 = vrot.lane.b32.xlu1 %v1468_v27, %s1478_s26 }
0x211b   :  { %v1213_v28 = vpop.permute.xlu0 %1212 }
0x211c   :  { %1352 = vmatmul.msk.f32.gmra.mxu1 %vm1226_vm5, %v1213_v28 }
0x211d   :  { %1216 = vrot.lane.b32.xlu1 %v1706_v17, %s1478_s26 }
0x2123   :  { %v1215_v3 = vpop.permute.xlu0 %1214 }
0x2124   :  { %1353 = vmatmul.msk.f32.gmra.mxu1 %vm1226_vm5, %v1215_v3 }
0x2125   :  { %1218 = vrot.lane.b32.xlu1 %v1739_v18, %s1478_s26 }
0x2187   :  { %v1199_v12 = vpop.permute.xlu1 %1198 }
0x2188   :  { %v1201_v32 = vmul.f32 %v1199_v12, %v1196_v7 }
0x218a   :  { %v1203_v33 = vadd.f32 %v1202_v29, %v1201_v32 }
0x218c   :  { %1224 = vrot.lane.b32.xlu2 %v1203_v33, %s1478_s26 }
0x218f   :  { %v1217_v0 = vpop.permute.xlu1 %1216 }
0x2190   :  { %1354 = vmatmul.msk.f32.vlgmr.msra.gmra.mxu2 %vm1226_vm5, %v1217_v0 }
0x2191   :  { %v1264_v34 = vpop.f32.mrf.mxu1 }
0x2192   :  { %v1265_v17 = vadd.f32 %v1835_v58, %v1264_v34 }
0x2194   :  { %1289 = vst.msk [vmem:[%s1906_s8] sm:$0xff] %vm1288_vm6, %v1265_v17 }
0x2197   :  { %v1219_v18 = vpop.permute.xlu1 %1218 }
0x2198   :  { %1355 = vmatmul.msk.f32.gmra.mxu2 %vm1226_vm5, %v1219_v18 }
0x2199   :  { %v1267_v2 = vpop.f32.mrf.mxu1 }
0x219a   :  { %v1268_v21 = vadd.f32 %v1835_v58, %v1267_v2 }
0x219c   :  { %1290 = vst.msk [vmem:[%s1906_s8 + $0x8] sm:$0xff] %vm1288_vm6, %v1268_v21 }
0x21a1   :  { %v1270_v4 = vpop.f32.mrf.mxu1 }
0x21a2   :  { %v1271_v35 = vadd.f32 %v1835_v58, %v1270_v4 }
0x21a4   :  { %1291 = vst.msk [vmem:[%s1906_s8 + $0x10] sm:$0xff] %vm1288_vm6, %v1271_v35 }
0x21e6   :  { %v1225_v37 = vpop.permute.xlu2 %1224 }
0x21e7   :  { %1358 = vmatmul.msk.f32.gmra.mxu3 %vm1226_vm5, %v1225_v37 }
0x2213   :  { %v1273_v39 = vpop.f32.mrf.mxu2 }
0x2214   :  { %v1274_v8 = vadd.f32 %v1835_v58, %v1273_v39 }
0x2216   :  { %1292 = vst.msk [vmem:[%s1906_s8 + $0x18] sm:$0xff] %vm1288_vm6, %v1274_v8 }
0x221b   :  { %v1276_v41 = vpop.f32.mrf.mxu2 }
0x221c   :  { %v1277_v42 = vadd.f32 %v1835_v58, %v1276_v41 }
0x221e   :  { %1293 = vst.msk [vmem:[%s1906_s8 + $0x20] sm:$0xff] %vm1288_vm6, %v1277_v42 }
0x226a   :  { %v1285_v43 = vpop.f32.mrf.mxu3 }
0x226b   :  { %v1286_v25 = vadd.f32 %v1835_v58, %v1285_v43 }
0x226d   :  { %1296 = vst.msk [vmem:[%s1906_s8 + $0x38] sm:$0xff] %vm1288_vm6, %v1286_v25 }

</bundles_post_ra>
